<compile_context>
chip_gen: v7x
topology: tpu7x:2x2x1
jax: 0.10.0
libtpu: 0.0.40
codegen_flags: <defaults>
</compile_context>

<pallas_src>
import jax
import jax.numpy as jnp
from jax.experimental import pallas as pl
from jax.experimental.pallas import tpu as pltpu


def spatial_decoder_pallas(x_nchw, w1, b1, w2, b2):
    """x_nchw: (B, Cin, H, W) f32.
       w1: (Cmid, Cin, 3, 3), b1: (Cmid,), w2: (Cout, Cmid, 3, 3), b2: (Cout,)
       (PyTorch nn.Conv2d parameter layouts)."""
    B, Cin, H, W = x_nchw.shape
    Cmid = w1.shape[0]
    Cout = w2.shape[0]
    Hp, Wp = H + 2, W + 2
    HW = H * W
    HWp = H * Wp                       # spatial grid used inside the kernel
    SP = (Hp + 1) * Wp                 # padded grid + 1 spare row for shifted views

    # Tap-major matmul weights: torch w[o, c, ky, kx] -> w_t[o, (ky*3+kx)*C + c].
    # (One-time layout transform; in a real model this is done once at load time.)
    w1_t = jnp.transpose(w1, (0, 2, 3, 1)).reshape(Cmid, 9 * Cin).astype(jnp.bfloat16)
    w2_t = jnp.transpose(w2, (0, 2, 3, 1)).reshape(Cout, 9 * Cmid).astype(jnp.bfloat16)
    b1c = b1.reshape(Cmid, 1).astype(jnp.float32)
    b2c = b2.reshape(Cout, 1).astype(jnp.float32)
    x_flat = x_nchw.reshape(B, Cin, HW)     # free reshape, stays NCHW-ordered

    def kernel(x_ref, w1_ref, b1_ref, w2_ref, b2_ref, o_ref,
               xpad_ref, hpad_ref, p1_ref, p2_ref):
        # Re-zero the padded scratches every step (a few dense bf16 stores).
        # Correct under megacore sharding of the "parallel" batch axis, where a
        # pl.when(program_id==0) init would never run on the second core.
        xpad_ref[...] = jnp.zeros(xpad_ref.shape, xpad_ref.dtype)
        hpad_ref[...] = jnp.zeros(hpad_ref.shape, hpad_ref.dtype)

        # Scatter the W-strided input rows onto the (W+2)-strided padded grid,
        # casting to bf16 for the MXU; the 1-px halo stays zero.
        for y in range(H):
            dst = (y + 1) * Wp + 1
            xpad_ref[:, dst:dst + W] = (
                x_ref[0, :, y * W:(y + 1) * W].astype(xpad_ref.dtype))

        # im2col for conv1: rows [k*Cin, (k+1)*Cin) of the patch matrix are a
        # contiguous shifted view of the padded grid (tap k = dy*3 + dx).
        for k in range(9):
            dy, dx = k // 3, k % 3
            s = dy * Wp + dx
            p1_ref[k * Cin:(k + 1) * Cin, :] = xpad_ref[:, s:s + HWp]

        # conv1: one (Cmid, 9*Cin) x (9*Cin, H*Wp) MXU matmul, f32 accumulation.
        acc1 = jnp.dot(w1_ref[...], p1_ref[...],
                       preferred_element_type=jnp.float32)
        acc1 = acc1 + b1_ref[...]                      # (Cmid, 1) bias broadcast
        acc1 = jnp.where(acc1 > 0, acc1, 0.1 * acc1)   # LeakyReLU(0.1) in f32

        # Columns with (col % Wp) >= W straddle a row boundary and are junk;
        # zero them so the single contiguous hidden store also (re)writes the
        # zero halo of the hidden grid.
        col = jax.lax.broadcasted_iota(jnp.int32, (1, HWp), 1)
        valid = (col % Wp) < W
        hpad_ref[:, Wp + 1:Wp + 1 + HWp] = (
            jnp.where(valid, acc1, 0.0).astype(hpad_ref.dtype))

        # im2col for conv2.
        for k in range(9):
            dy, dx = k // 3, k % 3
            s = dy * Wp + dx
            p2_ref[k * Cmid:(k + 1) * Cmid, :] = hpad_ref[:, s:s + HWp]

        # conv2: (Cout, 9*Cmid) x (9*Cmid, H*Wp).  Result is channel-major and
        # lane-dense (last dim H*Wp), so the final store is wide, not 2-lane masked.
        acc2 = jnp.dot(w2_ref[...], p2_ref[...],
                       preferred_element_type=jnp.float32)
        o_ref[0] = (acc2 + b2_ref[...]).astype(o_ref.dtype)

    out = pl.pallas_call(
        kernel,
        out_shape=jax.ShapeDtypeStruct((B, Cout, HWp), x_nchw.dtype),
        grid_spec=pltpu.PrefetchScalarGridSpec(
            num_scalar_prefetch=0,
            grid=(B,),
            in_specs=[
                pl.BlockSpec((1, Cin, HW), lambda b: (b, 0, 0)),        # input (NCHW, flat HW)
                pl.BlockSpec((Cmid, 9 * Cin), lambda b: (0, 0)),        # conv1 weights (bf16)
                pl.BlockSpec((Cmid, 1), lambda b: (0, 0)),              # conv1 bias (f32)
                pl.BlockSpec((Cout, 9 * Cmid), lambda b: (0, 0)),       # conv2 weights (bf16)
                pl.BlockSpec((Cout, 1), lambda b: (0, 0)),              # conv2 bias (f32)
            ],
            out_specs=pl.BlockSpec((1, Cout, HWp), lambda b: (b, 0, 0)),
            scratch_shapes=[
                pltpu.VMEM((Cin, SP), jnp.bfloat16),        # padded input grid
                pltpu.VMEM((Cmid, SP), jnp.bfloat16),       # padded hidden grid
                pltpu.VMEM((9 * Cin, HWp), jnp.bfloat16),   # conv1 im2col matrix
                pltpu.VMEM((9 * Cmid, HWp), jnp.bfloat16),  # conv2 im2col matrix
            ],
        ),
        compiler_params=pltpu.CompilerParams(
            dimension_semantics=("parallel",)),
    )(x_flat, w1_t, b1c, w2_t, b2c)

    # Drop the 2 junk columns per row and return NCHW, matching PyTorch.
    return out.reshape(B, Cout, H, Wp)[:, :, :, :W]


def _reference(x, w1, b1, w2, b2, compute_dtype):
    """lax.conv reference in NCHW/OIHW with selectable matmul-operand precision."""
    dn = ("NCHW", "OIHW", "NCHW")
    y = jax.lax.conv_general_dilated(
        x.astype(compute_dtype), w1.astype(compute_dtype), (1, 1), "SAME",
        dimension_numbers=dn, preferred_element_type=jnp.float32)
    y = y + b1[None, :, None, None]
    y = jnp.where(y > 0, y, 0.1 * y)
    y = jax.lax.conv_general_dilated(
        y.astype(compute_dtype), w2.astype(compute_dtype), (1, 1), "SAME",
        dimension_numbers=dn, preferred_element_type=jnp.float32)
    return y + b2[None, :, None, None]


if __name__ == "__main__":
    # Small shapes consistent with the module's forward (NCHW input).
    B, Cin, H, W = 2, 32, 16, 16        # embed_dim=32 (small synthetic setting)
    Cmid, Cout = 64, 2

    key = jax.random.PRNGKey(0)
    k1, k2, k3, k4, k5 = jax.random.split(key, 5)
    x = jax.random.normal(k1, (B, Cin, H, W), jnp.float32)
    # PyTorch Conv2d parameter layouts: weight (out, in, kH, kW), bias (out,).
    w1 = 0.05 * jax.random.normal(k2, (Cmid, Cin, 3, 3), jnp.float32)
    b1 = 0.05 * jax.random.normal(k3, (Cmid,), jnp.float32)
    w2 = 0.05 * jax.random.normal(k4, (Cout, Cmid, 3, 3), jnp.float32)
    b2 = 0.05 * jax.random.normal(k5, (Cout,), jnp.float32)

    out = spatial_decoder_pallas(x, w1, b1, w2, b2)
    out = jax.block_until_ready(out)
    assert out.shape == (B, Cout, H, W)

    # Precision-matched reference (bf16 MXU operands, f32 accumulation).
    ref_bf16 = _reference(x, w1, b1, w2, b2, jnp.bfloat16)
    assert jnp.allclose(out, ref_bf16, atol=5e-3, rtol=5e-3), (
        "mismatch vs bf16-precision lax.conv reference")
    # Sanity check vs the full-f32 reference (difference = bf16 rounding only).
    ref_f32 = _reference(x, w1, b1, w2, b2, jnp.float32)
    assert jnp.allclose(out, ref_f32, atol=5e-2, rtol=5e-2), (
        "mismatch vs f32 lax.conv reference")

    print("KERNEL_OK")
</pallas_src>

<mosaic_0001>
module attributes {stable_mosaic.version = 11 : i64} {
  func.func @kernel(%arg0: i32, %arg1: memref<1x32x256xf32, #tpu.memory_space<vmem>>, %arg2: memref<64x288xbf16, #tpu.memory_space<vmem>>, %arg3: memref<64x1xf32, #tpu.memory_space<vmem>>, %arg4: memref<2x576xbf16, #tpu.memory_space<vmem>>, %arg5: memref<2x1xf32, #tpu.memory_space<vmem>>, %arg6: memref<1x2x288xf32, #tpu.memory_space<vmem>>, %arg7: memref<32x342xbf16, #tpu.memory_space<vmem>>, %arg8: memref<64x342xbf16, #tpu.memory_space<vmem>>, %arg9: memref<288x288xbf16, #tpu.memory_space<vmem>>, %arg10: memref<576x288xbf16, #tpu.memory_space<vmem>>) attributes {dimension_semantics = [#tpu.dimension_semantics<parallel>], iteration_bounds = array<i64: 2>, scalar_prefetch = 0 : i64, scratch_operands = 4 : i64, tpu.core_type = #tpu.core_type<tc>, window_params = [{transform_indices = @transform_0, window_bounds = array<i64: 1, 32, 256>}, {pipeline_mode = #tpu.pipeline_mode<synchronous>, transform_indices = @transform_1, window_bounds = array<i64: 64, 288>}, {pipeline_mode = #tpu.pipeline_mode<synchronous>, transform_indices = @transform_2, window_bounds = array<i64: 64, 1>}, {pipeline_mode = #tpu.pipeline_mode<synchronous>, transform_indices = @transform_3, window_bounds = array<i64: 2, 576>}, {pipeline_mode = #tpu.pipeline_mode<synchronous>, transform_indices = @transform_4, window_bounds = array<i64: 2, 1>}, {transform_indices = @transform_5, window_bounds = array<i64: 1, 2, 288>}]} {
    %cst = arith.constant 0.000000e+00 : bf16
    %0 = vector.broadcast %cst : bf16 to vector<32x342xbf16>
    %c0 = arith.constant 0 : index
    %c0_0 = arith.constant 0 : index
    %1 = vector.load %arg7[%c0, %c0_0] : memref<32x342xbf16, #tpu.memory_space<vmem>>, vector<32x342xbf16>
    tpu.vector_store %arg7[%c0, %c0_0], %0 {strides = array<i32>} : memref<32x342xbf16, #tpu.memory_space<vmem>>, vector<32x342xbf16>,
    %cst_1 = arith.constant 0.000000e+00 : bf16
    %2 = vector.broadcast %cst_1 : bf16 to vector<64x342xbf16>
    %c0_2 = arith.constant 0 : index
    %c0_3 = arith.constant 0 : index
    %3 = vector.load %arg8[%c0_2, %c0_3] : memref<64x342xbf16, #tpu.memory_space<vmem>>, vector<64x342xbf16>
    tpu.vector_store %arg8[%c0_2, %c0_3], %2 {strides = array<i32>} : memref<64x342xbf16, #tpu.memory_space<vmem>>, vector<64x342xbf16>,
    %c0_4 = arith.constant 0 : index
    %c0_5 = arith.constant 0 : index
    %c0_6 = arith.constant 0 : index
    %4 = vector.load %arg1[%c0_4, %c0_5, %c0_6] : memref<1x32x256xf32, #tpu.memory_space<vmem>>, vector<1x32x16xf32>
    %5 = vector.shape_cast %4 : vector<1x32x16xf32> to vector<32x16xf32>
    %6 = arith.truncf %5 : vector<32x16xf32> to vector<32x16xbf16>
    %c0_7 = arith.constant 0 : index
    %c19 = arith.constant 19 : index
    %7 = vector.load %arg7[%c0_7, %c19] : memref<32x342xbf16, #tpu.memory_space<vmem>>, vector<32x16xbf16>
    tpu.vector_store %arg7[%c0_7, %c19], %6 {strides = array<i32>} : memref<32x342xbf16, #tpu.memory_space<vmem>>, vector<32x16xbf16>,
    %c0_8 = arith.constant 0 : index
    %c0_9 = arith.constant 0 : index
    %c16 = arith.constant 16 : index
    %8 = vector.load %arg1[%c0_8, %c0_9, %c16] : memref<1x32x256xf32, #tpu.memory_space<vmem>>, vector<1x32x16xf32>
    %9 = vector.shape_cast %8 : vector<1x32x16xf32> to vector<32x16xf32>
    %10 = arith.truncf %9 : vector<32x16xf32> to vector<32x16xbf16>
    %c0_10 = arith.constant 0 : index
    %c37 = arith.constant 37 : index
    %11 = vector.load %arg7[%c0_10, %c37] : memref<32x342xbf16, #tpu.memory_space<vmem>>, vector<32x16xbf16>
    tpu.vector_store %arg7[%c0_10, %c37], %10 {strides = array<i32>} : memref<32x342xbf16, #tpu.memory_space<vmem>>, vector<32x16xbf16>,
    %c0_11 = arith.constant 0 : index
    %c0_12 = arith.constant 0 : index
    %c32 = arith.constant 32 : index
    %12 = vector.load %arg1[%c0_11, %c0_12, %c32] : memref<1x32x256xf32, #tpu.memory_space<vmem>>, vector<1x32x16xf32>
    %13 = vector.shape_cast %12 : vector<1x32x16xf32> to vector<32x16xf32>
    %14 = arith.truncf %13 : vector<32x16xf32> to vector<32x16xbf16>
    %c0_13 = arith.constant 0 : index
    %c55 = arith.constant 55 : index
    %15 = vector.load %arg7[%c0_13, %c55] : memref<32x342xbf16, #tpu.memory_space<vmem>>, vector<32x16xbf16>
    tpu.vector_store %arg7[%c0_13, %c55], %14 {strides = array<i32>} : memref<32x342xbf16, #tpu.memory_space<vmem>>, vector<32x16xbf16>,
    %c0_14 = arith.constant 0 : index
    %c0_15 = arith.constant 0 : index
    %c48 = arith.constant 48 : index
    %16 = vector.load %arg1[%c0_14, %c0_15, %c48] : memref<1x32x256xf32, #tpu.memory_space<vmem>>, vector<1x32x16xf32>
    %17 = vector.shape_cast %16 : vector<1x32x16xf32> to vector<32x16xf32>
    %18 = arith.truncf %17 : vector<32x16xf32> to vector<32x16xbf16>
    %c0_16 = arith.constant 0 : index
    %c73 = arith.constant 73 : index
    %19 = vector.load %arg7[%c0_16, %c73] : memref<32x342xbf16, #tpu.memory_space<vmem>>, vector<32x16xbf16>
    tpu.vector_store %arg7[%c0_16, %c73], %18 {strides = array<i32>} : memref<32x342xbf16, #tpu.memory_space<vmem>>, vector<32x16xbf16>,
    %c0_17 = arith.constant 0 : index
    %c0_18 = arith.constant 0 : index
    %c64 = arith.constant 64 : index
    %20 = vector.load %arg1[%c0_17, %c0_18, %c64] : memref<1x32x256xf32, #tpu.memory_space<vmem>>, vector<1x32x16xf32>
    %21 = vector.shape_cast %20 : vector<1x32x16xf32> to vector<32x16xf32>
    %22 = arith.truncf %21 : vector<32x16xf32> to vector<32x16xbf16>
    %c0_19 = arith.constant 0 : index
    %c91 = arith.constant 91 : index
    %23 = vector.load %arg7[%c0_19, %c91] : memref<32x342xbf16, #tpu.memory_space<vmem>>, vector<32x16xbf16>
    tpu.vector_store %arg7[%c0_19, %c91], %22 {strides = array<i32>} : memref<32x342xbf16, #tpu.memory_space<vmem>>, vector<32x16xbf16>,
    %c0_20 = arith.constant 0 : index
    %c0_21 = arith.constant 0 : index
    %c80 = arith.constant 80 : index
    %24 = vector.load %arg1[%c0_20, %c0_21, %c80] : memref<1x32x256xf32, #tpu.memory_space<vmem>>, vector<1x32x16xf32>
    %25 = vector.shape_cast %24 : vector<1x32x16xf32> to vector<32x16xf32>
    %26 = arith.truncf %25 : vector<32x16xf32> to vector<32x16xbf16>
    %c0_22 = arith.constant 0 : index
    %c109 = arith.constant 109 : index
    %27 = vector.load %arg7[%c0_22, %c109] : memref<32x342xbf16, #tpu.memory_space<vmem>>, vector<32x16xbf16>
    tpu.vector_store %arg7[%c0_22, %c109], %26 {strides = array<i32>} : memref<32x342xbf16, #tpu.memory_space<vmem>>, vector<32x16xbf16>,
    %c0_23 = arith.constant 0 : index
    %c0_24 = arith.constant 0 : index
    %c96 = arith.constant 96 : index
    %28 = vector.load %arg1[%c0_23, %c0_24, %c96] : memref<1x32x256xf32, #tpu.memory_space<vmem>>, vector<1x32x16xf32>
    %29 = vector.shape_cast %28 : vector<1x32x16xf32> to vector<32x16xf32>
    %30 = arith.truncf %29 : vector<32x16xf32> to vector<32x16xbf16>
    %c0_25 = arith.constant 0 : index
    %c127 = arith.constant 127 : index
    %31 = vector.load %arg7[%c0_25, %c127] : memref<32x342xbf16, #tpu.memory_space<vmem>>, vector<32x16xbf16>
    tpu.vector_store %arg7[%c0_25, %c127], %30 {strides = array<i32>} : memref<32x342xbf16, #tpu.memory_space<vmem>>, vector<32x16xbf16>,
    %c0_26 = arith.constant 0 : index
    %c0_27 = arith.constant 0 : index
    %c112 = arith.constant 112 : index
    %32 = vector.load %arg1[%c0_26, %c0_27, %c112] : memref<1x32x256xf32, #tpu.memory_space<vmem>>, vector<1x32x16xf32>
    %33 = vector.shape_cast %32 : vector<1x32x16xf32> to vector<32x16xf32>
    %34 = arith.truncf %33 : vector<32x16xf32> to vector<32x16xbf16>
    %c0_28 = arith.constant 0 : index
    %c145 = arith.constant 145 : index
    %35 = vector.load %arg7[%c0_28, %c145] : memref<32x342xbf16, #tpu.memory_space<vmem>>, vector<32x16xbf16>
    tpu.vector_store %arg7[%c0_28, %c145], %34 {strides = array<i32>} : memref<32x342xbf16, #tpu.memory_space<vmem>>, vector<32x16xbf16>,
    %c0_29 = arith.constant 0 : index
    %c0_30 = arith.constant 0 : index
    %c128 = arith.constant 128 : index
    %36 = vector.load %arg1[%c0_29, %c0_30, %c128] : memref<1x32x256xf32, #tpu.memory_space<vmem>>, vector<1x32x16xf32>
    %37 = vector.shape_cast %36 : vector<1x32x16xf32> to vector<32x16xf32>
    %38 = arith.truncf %37 : vector<32x16xf32> to vector<32x16xbf16>
    %c0_31 = arith.constant 0 : index
    %c163 = arith.constant 163 : index
    %39 = vector.load %arg7[%c0_31, %c163] : memref<32x342xbf16, #tpu.memory_space<vmem>>, vector<32x16xbf16>
    tpu.vector_store %arg7[%c0_31, %c163], %38 {strides = array<i32>} : memref<32x342xbf16, #tpu.memory_space<vmem>>, vector<32x16xbf16>,
    %c0_32 = arith.constant 0 : index
    %c0_33 = arith.constant 0 : index
    %c144 = arith.constant 144 : index
    %40 = vector.load %arg1[%c0_32, %c0_33, %c144] : memref<1x32x256xf32, #tpu.memory_space<vmem>>, vector<1x32x16xf32>
    %41 = vector.shape_cast %40 : vector<1x32x16xf32> to vector<32x16xf32>
    %42 = arith.truncf %41 : vector<32x16xf32> to vector<32x16xbf16>
    %c0_34 = arith.constant 0 : index
    %c181 = arith.constant 181 : index
    %43 = vector.load %arg7[%c0_34, %c181] : memref<32x342xbf16, #tpu.memory_space<vmem>>, vector<32x16xbf16>
    tpu.vector_store %arg7[%c0_34, %c181], %42 {strides = array<i32>} : memref<32x342xbf16, #tpu.memory_space<vmem>>, vector<32x16xbf16>,
    %c0_35 = arith.constant 0 : index
    %c0_36 = arith.constant 0 : index
    %c160 = arith.constant 160 : index
    %44 = vector.load %arg1[%c0_35, %c0_36, %c160] : memref<1x32x256xf32, #tpu.memory_space<vmem>>, vector<1x32x16xf32>
    %45 = vector.shape_cast %44 : vector<1x32x16xf32> to vector<32x16xf32>
    %46 = arith.truncf %45 : vector<32x16xf32> to vector<32x16xbf16>
    %c0_37 = arith.constant 0 : index
    %c199 = arith.constant 199 : index
    %47 = vector.load %arg7[%c0_37, %c199] : memref<32x342xbf16, #tpu.memory_space<vmem>>, vector<32x16xbf16>
    tpu.vector_store %arg7[%c0_37, %c199], %46 {strides = array<i32>} : memref<32x342xbf16, #tpu.memory_space<vmem>>, vector<32x16xbf16>,
    %c0_38 = arith.constant 0 : index
    %c0_39 = arith.constant 0 : index
    %c176 = arith.constant 176 : index
    %48 = vector.load %arg1[%c0_38, %c0_39, %c176] : memref<1x32x256xf32, #tpu.memory_space<vmem>>, vector<1x32x16xf32>
    %49 = vector.shape_cast %48 : vector<1x32x16xf32> to vector<32x16xf32>
    %50 = arith.truncf %49 : vector<32x16xf32> to vector<32x16xbf16>
    %c0_40 = arith.constant 0 : index
    %c217 = arith.constant 217 : index
    %51 = vector.load %arg7[%c0_40, %c217] : memref<32x342xbf16, #tpu.memory_space<vmem>>, vector<32x16xbf16>
    tpu.vector_store %arg7[%c0_40, %c217], %50 {strides = array<i32>} : memref<32x342xbf16, #tpu.memory_space<vmem>>, vector<32x16xbf16>,
    %c0_41 = arith.constant 0 : index
    %c0_42 = arith.constant 0 : index
    %c192 = arith.constant 192 : index
    %52 = vector.load %arg1[%c0_41, %c0_42, %c192] : memref<1x32x256xf32, #tpu.memory_space<vmem>>, vector<1x32x16xf32>
    %53 = vector.shape_cast %52 : vector<1x32x16xf32> to vector<32x16xf32>
    %54 = arith.truncf %53 : vector<32x16xf32> to vector<32x16xbf16>
    %c0_43 = arith.constant 0 : index
    %c235 = arith.constant 235 : index
    %55 = vector.load %arg7[%c0_43, %c235] : memref<32x342xbf16, #tpu.memory_space<vmem>>, vector<32x16xbf16>
    tpu.vector_store %arg7[%c0_43, %c235], %54 {strides = array<i32>} : memref<32x342xbf16, #tpu.memory_space<vmem>>, vector<32x16xbf16>,
    %c0_44 = arith.constant 0 : index
    %c0_45 = arith.constant 0 : index
    %c208 = arith.constant 208 : index
    %56 = vector.load %arg1[%c0_44, %c0_45, %c208] : memref<1x32x256xf32, #tpu.memory_space<vmem>>, vector<1x32x16xf32>
    %57 = vector.shape_cast %56 : vector<1x32x16xf32> to vector<32x16xf32>
    %58 = arith.truncf %57 : vector<32x16xf32> to vector<32x16xbf16>
    %c0_46 = arith.constant 0 : index
    %c253 = arith.constant 253 : index
    %59 = vector.load %arg7[%c0_46, %c253] : memref<32x342xbf16, #tpu.memory_space<vmem>>, vector<32x16xbf16>
    tpu.vector_store %arg7[%c0_46, %c253], %58 {strides = array<i32>} : memref<32x342xbf16, #tpu.memory_space<vmem>>, vector<32x16xbf16>,
    %c0_47 = arith.constant 0 : index
    %c0_48 = arith.constant 0 : index
    %c224 = arith.constant 224 : index
    %60 = vector.load %arg1[%c0_47, %c0_48, %c224] : memref<1x32x256xf32, #tpu.memory_space<vmem>>, vector<1x32x16xf32>
    %61 = vector.shape_cast %60 : vector<1x32x16xf32> to vector<32x16xf32>
    %62 = arith.truncf %61 : vector<32x16xf32> to vector<32x16xbf16>
    %c0_49 = arith.constant 0 : index
    %c271 = arith.constant 271 : index
    %63 = vector.load %arg7[%c0_49, %c271] : memref<32x342xbf16, #tpu.memory_space<vmem>>, vector<32x16xbf16>
    tpu.vector_store %arg7[%c0_49, %c271], %62 {strides = array<i32>} : memref<32x342xbf16, #tpu.memory_space<vmem>>, vector<32x16xbf16>,
    %c0_50 = arith.constant 0 : index
    %c0_51 = arith.constant 0 : index
    %c240 = arith.constant 240 : index
    %64 = vector.load %arg1[%c0_50, %c0_51, %c240] : memref<1x32x256xf32, #tpu.memory_space<vmem>>, vector<1x32x16xf32>
    %65 = vector.shape_cast %64 : vector<1x32x16xf32> to vector<32x16xf32>
    %66 = arith.truncf %65 : vector<32x16xf32> to vector<32x16xbf16>
    %c0_52 = arith.constant 0 : index
    %c289 = arith.constant 289 : index
    %67 = vector.load %arg7[%c0_52, %c289] : memref<32x342xbf16, #tpu.memory_space<vmem>>, vector<32x16xbf16>
    tpu.vector_store %arg7[%c0_52, %c289], %66 {strides = array<i32>} : memref<32x342xbf16, #tpu.memory_space<vmem>>, vector<32x16xbf16>,
    %c0_53 = arith.constant 0 : index
    %c0_54 = arith.constant 0 : index
    %68 = vector.load %arg7[%c0_53, %c0_54] : memref<32x342xbf16, #tpu.memory_space<vmem>>, vector<32x288xbf16>
    %c0_55 = arith.constant 0 : index
    %c0_56 = arith.constant 0 : index
    %69 = vector.load %arg9[%c0_55, %c0_56] : memref<288x288xbf16, #tpu.memory_space<vmem>>, vector<32x288xbf16>
    tpu.vector_store %arg9[%c0_55, %c0_56], %68 {strides = array<i32>} : memref<288x288xbf16, #tpu.memory_space<vmem>>, vector<32x288xbf16>,
    %c0_57 = arith.constant 0 : index
    %c1 = arith.constant 1 : index
    %70 = vector.load %arg7[%c0_57, %c1] : memref<32x342xbf16, #tpu.memory_space<vmem>>, vector<32x288xbf16>
    %c32_58 = arith.constant 32 : index
    %c0_59 = arith.constant 0 : index
    %71 = vector.load %arg9[%c32_58, %c0_59] : memref<288x288xbf16, #tpu.memory_space<vmem>>, vector<32x288xbf16>
    tpu.vector_store %arg9[%c32_58, %c0_59], %70 {strides = array<i32>} : memref<288x288xbf16, #tpu.memory_space<vmem>>, vector<32x288xbf16>,
    %c0_60 = arith.constant 0 : index
    %c2 = arith.constant 2 : index
    %72 = vector.load %arg7[%c0_60, %c2] : memref<32x342xbf16, #tpu.memory_space<vmem>>, vector<32x288xbf16>
    %c64_61 = arith.constant 64 : index
    %c0_62 = arith.constant 0 : index
    %73 = vector.load %arg9[%c64_61, %c0_62] : memref<288x288xbf16, #tpu.memory_space<vmem>>, vector<32x288xbf16>
    tpu.vector_store %arg9[%c64_61, %c0_62], %72 {strides = array<i32>} : memref<288x288xbf16, #tpu.memory_space<vmem>>, vector<32x288xbf16>,
    %c0_63 = arith.constant 0 : index
    %c18 = arith.constant 18 : index
    %74 = vector.load %arg7[%c0_63, %c18] : memref<32x342xbf16, #tpu.memory_space<vmem>>, vector<32x288xbf16>
    %c96_64 = arith.constant 96 : index
    %c0_65 = arith.constant 0 : index
    %75 = vector.load %arg9[%c96_64, %c0_65] : memref<288x288xbf16, #tpu.memory_space<vmem>>, vector<32x288xbf16>
    tpu.vector_store %arg9[%c96_64, %c0_65], %74 {strides = array<i32>} : memref<288x288xbf16, #tpu.memory_space<vmem>>, vector<32x288xbf16>,
    %c0_66 = arith.constant 0 : index
    %c19_67 = arith.constant 19 : index
    %76 = vector.load %arg7[%c0_66, %c19_67] : memref<32x342xbf16, #tpu.memory_space<vmem>>, vector<32x288xbf16>
    %c128_68 = arith.constant 128 : index
    %c0_69 = arith.constant 0 : index
    %77 = vector.load %arg9[%c128_68, %c0_69] : memref<288x288xbf16, #tpu.memory_space<vmem>>, vector<32x288xbf16>
    tpu.vector_store %arg9[%c128_68, %c0_69], %76 {strides = array<i32>} : memref<288x288xbf16, #tpu.memory_space<vmem>>, vector<32x288xbf16>,
    %c0_70 = arith.constant 0 : index
    %c20 = arith.constant 20 : index
    %78 = vector.load %arg7[%c0_70, %c20] : memref<32x342xbf16, #tpu.memory_space<vmem>>, vector<32x288xbf16>
    %c160_71 = arith.constant 160 : index
    %c0_72 = arith.constant 0 : index
    %79 = vector.load %arg9[%c160_71, %c0_72] : memref<288x288xbf16, #tpu.memory_space<vmem>>, vector<32x288xbf16>
    tpu.vector_store %arg9[%c160_71, %c0_72], %78 {strides = array<i32>} : memref<288x288xbf16, #tpu.memory_space<vmem>>, vector<32x288xbf16>,
    %c0_73 = arith.constant 0 : index
    %c36 = arith.constant 36 : index
    %80 = vector.load %arg7[%c0_73, %c36] : memref<32x342xbf16, #tpu.memory_space<vmem>>, vector<32x288xbf16>
    %c192_74 = arith.constant 192 : index
    %c0_75 = arith.constant 0 : index
    %81 = vector.load %arg9[%c192_74, %c0_75] : memref<288x288xbf16, #tpu.memory_space<vmem>>, vector<32x288xbf16>
    tpu.vector_store %arg9[%c192_74, %c0_75], %80 {strides = array<i32>} : memref<288x288xbf16, #tpu.memory_space<vmem>>, vector<32x288xbf16>,
    %c0_76 = arith.constant 0 : index
    %c37_77 = arith.constant 37 : index
    %82 = vector.load %arg7[%c0_76, %c37_77] : memref<32x342xbf16, #tpu.memory_space<vmem>>, vector<32x288xbf16>
    %c224_78 = arith.constant 224 : index
    %c0_79 = arith.constant 0 : index
    %83 = vector.load %arg9[%c224_78, %c0_79] : memref<288x288xbf16, #tpu.memory_space<vmem>>, vector<32x288xbf16>
    tpu.vector_store %arg9[%c224_78, %c0_79], %82 {strides = array<i32>} : memref<288x288xbf16, #tpu.memory_space<vmem>>, vector<32x288xbf16>,
    %c0_80 = arith.constant 0 : index
    %c38 = arith.constant 38 : index
    %84 = vector.load %arg7[%c0_80, %c38] : memref<32x342xbf16, #tpu.memory_space<vmem>>, vector<32x288xbf16>
    %c256 = arith.constant 256 : index
    %c0_81 = arith.constant 0 : index
    %85 = vector.load %arg9[%c256, %c0_81] : memref<288x288xbf16, #tpu.memory_space<vmem>>, vector<32x288xbf16>
    tpu.vector_store %arg9[%c256, %c0_81], %84 {strides = array<i32>} : memref<288x288xbf16, #tpu.memory_space<vmem>>, vector<32x288xbf16>,
    %c0_82 = arith.constant 0 : index
    %c0_83 = arith.constant 0 : index
    %86 = vector.load %arg2[%c0_82, %c0_83] : memref<64x288xbf16, #tpu.memory_space<vmem>>, vector<64x288xbf16>
    %c0_84 = arith.constant 0 : index
    %c0_85 = arith.constant 0 : index
    %87 = vector.load %arg9[%c0_84, %c0_85] : memref<288x288xbf16, #tpu.memory_space<vmem>>, vector<288x288xbf16>
    %cst_86 = arith.constant dense<0.000000e+00> : vector<64x288xf32>
    %88 = tpu.matmul %86, %87, %cst_86 {dimension_numbers = #tpu.dot_dimension_numbers<[1], [0], [0], [1], [0, 0, 1, 1], [], []>} : vector<64x288xbf16>, vector<288x288xbf16>, vector<64x288xf32> -> vector<64x288xf32>
    %c0_87 = arith.constant 0 : index
    %c0_88 = arith.constant 0 : index
    %89 = vector.load %arg3[%c0_87, %c0_88] : memref<64x1xf32, #tpu.memory_space<vmem>>, vector<64x1xf32>
    %90 = vector.broadcast %89 : vector<64x1xf32> to vector<64x288xf32>
    %91 = arith.addf %88, %90 : vector<64x288xf32>
    %cst_89 = arith.constant 0.000000e+00 : f32
    %92 = vector.broadcast %cst_89 : f32 to vector<64x288xf32>
    %93 = arith.cmpf ogt, %91, %92 : vector<64x288xf32>
    %cst_90 = arith.constant 1.000000e-01 : f32
    %94 = vector.broadcast %cst_90 : f32 to vector<64x288xf32>
    %95 = arith.mulf %94, %91 : vector<64x288xf32>
    %96 = arith.select %93, %91, %95 : vector<64x288xi1>, vector<64x288xf32>
    %97 = tpu.iota {dimensions = array<i32: 1>} : vector<1x288xi32>
    %c18_i32 = arith.constant 18 : i32
    %c0_i32 = arith.constant 0 : i32
    %98 = arith.cmpi eq, %c18_i32, %c0_i32 : i32
    %c1_i32 = arith.constant 1 : i32
    %99 = arith.select %98, %c1_i32, %c18_i32 : i32
    %100 = vector.broadcast %99 : i32 to vector<1x288xi32>
    %101 = arith.remsi %97, %100 : vector<1x288xi32>
    %c0_i32_91 = arith.constant 0 : i32
    %102 = vector.broadcast %c0_i32_91 : i32 to vector<1x288xi32>
    %103 = arith.cmpi ne, %101, %102 : vector<1x288xi32>
    %c0_i32_92 = arith.constant 0 : i32
    %104 = vector.broadcast %c0_i32_92 : i32 to vector<1x288xi32>
    %105 = arith.cmpi slt, %101, %104 : vector<1x288xi32>
    %c0_i32_93 = arith.constant 0 : i32
    %106 = arith.cmpi slt, %99, %c0_i32_93 : i32
    %107 = vector.broadcast %106 : i1 to vector<1x288xi1>
    %108 = vector.broadcast %107 : vector<1x288xi1> to vector<1x288xi1>
    %109 = arith.xori %105, %108 : vector<1x288xi1>
    %110 = arith.andi %109, %103 : vector<1x288xi1>
    %111 = vector.broadcast %99 : i32 to vector<1x288xi32>
    %112 = arith.addi %101, %111 : vector<1x288xi32>
    %113 = arith.select %110, %112, %101 : vector<1x288xi1>, vector<1x288xi32>
    %c16_i32 = arith.constant 16 : i32
    %114 = vector.broadcast %c16_i32 : i32 to vector<1x288xi32>
    %115 = arith.cmpi slt, %113, %114 : vector<1x288xi32>
    %cst_94 = arith.constant 0.000000e+00 : f32
    %116 = vector.shape_cast %115 : vector<1x288xi1> to vector<1x288xi1>
    %117 = vector.broadcast %116 : vector<1x288xi1> to vector<64x288xi1>
    %118 = vector.broadcast %cst_94 : f32 to vector<64x288xf32>
    %119 = arith.select %117, %96, %118 : vector<64x288xi1>, vector<64x288xf32>
    %120 = arith.truncf %119 : vector<64x288xf32> to vector<64x288xbf16>
    %c0_95 = arith.constant 0 : index
    %c19_96 = arith.constant 19 : index
    %121 = vector.load %arg8[%c0_95, %c19_96] : memref<64x342xbf16, #tpu.memory_space<vmem>>, vector<64x288xbf16>
    tpu.vector_store %arg8[%c0_95, %c19_96], %120 {strides = array<i32>} : memref<64x342xbf16, #tpu.memory_space<vmem>>, vector<64x288xbf16>,
    %c0_97 = arith.constant 0 : index
    %c0_98 = arith.constant 0 : index
    %122 = vector.load %arg8[%c0_97, %c0_98] : memref<64x342xbf16, #tpu.memory_space<vmem>>, vector<64x288xbf16>
    %c0_99 = arith.constant 0 : index
    %c0_100 = arith.constant 0 : index
    %123 = vector.load %arg10[%c0_99, %c0_100] : memref<576x288xbf16, #tpu.memory_space<vmem>>, vector<64x288xbf16>
    tpu.vector_store %arg10[%c0_99, %c0_100], %122 {strides = array<i32>} : memref<576x288xbf16, #tpu.memory_space<vmem>>, vector<64x288xbf16>,
    %c0_101 = arith.constant 0 : index
    %c1_102 = arith.constant 1 : index
    %124 = vector.load %arg8[%c0_101, %c1_102] : memref<64x342xbf16, #tpu.memory_space<vmem>>, vector<64x288xbf16>
    %c64_103 = arith.constant 64 : index
    %c0_104 = arith.constant 0 : index
    %125 = vector.load %arg10[%c64_103, %c0_104] : memref<576x288xbf16, #tpu.memory_space<vmem>>, vector<64x288xbf16>
    tpu.vector_store %arg10[%c64_103, %c0_104], %124 {strides = array<i32>} : memref<576x288xbf16, #tpu.memory_space<vmem>>, vector<64x288xbf16>,
    %c0_105 = arith.constant 0 : index
    %c2_106 = arith.constant 2 : index
    %126 = vector.load %arg8[%c0_105, %c2_106] : memref<64x342xbf16, #tpu.memory_space<vmem>>, vector<64x288xbf16>
    %c128_107 = arith.constant 128 : index
    %c0_108 = arith.constant 0 : index
    %127 = vector.load %arg10[%c128_107, %c0_108] : memref<576x288xbf16, #tpu.memory_space<vmem>>, vector<64x288xbf16>
    tpu.vector_store %arg10[%c128_107, %c0_108], %126 {strides = array<i32>} : memref<576x288xbf16, #tpu.memory_space<vmem>>, vector<64x288xbf16>,
    %c0_109 = arith.constant 0 : index
    %c18_110 = arith.constant 18 : index
    %128 = vector.load %arg8[%c0_109, %c18_110] : memref<64x342xbf16, #tpu.memory_space<vmem>>, vector<64x288xbf16>
    %c192_111 = arith.constant 192 : index
    %c0_112 = arith.constant 0 : index
    %129 = vector.load %arg10[%c192_111, %c0_112] : memref<576x288xbf16, #tpu.memory_space<vmem>>, vector<64x288xbf16>
    tpu.vector_store %arg10[%c192_111, %c0_112], %128 {strides = array<i32>} : memref<576x288xbf16, #tpu.memory_space<vmem>>, vector<64x288xbf16>,
    %c0_113 = arith.constant 0 : index
    %c19_114 = arith.constant 19 : index
    %130 = vector.load %arg8[%c0_113, %c19_114] : memref<64x342xbf16, #tpu.memory_space<vmem>>, vector<64x288xbf16>
    %c256_115 = arith.constant 256 : index
    %c0_116 = arith.constant 0 : index
    %131 = vector.load %arg10[%c256_115, %c0_116] : memref<576x288xbf16, #tpu.memory_space<vmem>>, vector<64x288xbf16>
    tpu.vector_store %arg10[%c256_115, %c0_116], %130 {strides = array<i32>} : memref<576x288xbf16, #tpu.memory_space<vmem>>, vector<64x288xbf16>,
    %c0_117 = arith.constant 0 : index
    %c20_118 = arith.constant 20 : index
    %132 = vector.load %arg8[%c0_117, %c20_118] : memref<64x342xbf16, #tpu.memory_space<vmem>>, vector<64x288xbf16>
    %c320 = arith.constant 320 : index
    %c0_119 = arith.constant 0 : index
    %133 = vector.load %arg10[%c320, %c0_119] : memref<576x288xbf16, #tpu.memory_space<vmem>>, vector<64x288xbf16>
    tpu.vector_store %arg10[%c320, %c0_119], %132 {strides = array<i32>} : memref<576x288xbf16, #tpu.memory_space<vmem>>, vector<64x288xbf16>,
    %c0_120 = arith.constant 0 : index
    %c36_121 = arith.constant 36 : index
    %134 = vector.load %arg8[%c0_120, %c36_121] : memref<64x342xbf16, #tpu.memory_space<vmem>>, vector<64x288xbf16>
    %c384 = arith.constant 384 : index
    %c0_122 = arith.constant 0 : index
    %135 = vector.load %arg10[%c384, %c0_122] : memref<576x288xbf16, #tpu.memory_space<vmem>>, vector<64x288xbf16>
    tpu.vector_store %arg10[%c384, %c0_122], %134 {strides = array<i32>} : memref<576x288xbf16, #tpu.memory_space<vmem>>, vector<64x288xbf16>,
    %c0_123 = arith.constant 0 : index
    %c37_124 = arith.constant 37 : index
    %136 = vector.load %arg8[%c0_123, %c37_124] : memref<64x342xbf16, #tpu.memory_space<vmem>>, vector<64x288xbf16>
    %c448 = arith.constant 448 : index
    %c0_125 = arith.constant 0 : index
    %137 = vector.load %arg10[%c448, %c0_125] : memref<576x288xbf16, #tpu.memory_space<vmem>>, vector<64x288xbf16>
    tpu.vector_store %arg10[%c448, %c0_125], %136 {strides = array<i32>} : memref<576x288xbf16, #tpu.memory_space<vmem>>, vector<64x288xbf16>,
    %c0_126 = arith.constant 0 : index
    %c38_127 = arith.constant 38 : index
    %138 = vector.load %arg8[%c0_126, %c38_127] : memref<64x342xbf16, #tpu.memory_space<vmem>>, vector<64x288xbf16>
    %c512 = arith.constant 512 : index
    %c0_128 = arith.constant 0 : index
    %139 = vector.load %arg10[%c512, %c0_128] : memref<576x288xbf16, #tpu.memory_space<vmem>>, vector<64x288xbf16>
    tpu.vector_store %arg10[%c512, %c0_128], %138 {strides = array<i32>} : memref<576x288xbf16, #tpu.memory_space<vmem>>, vector<64x288xbf16>,
    %c0_129 = arith.constant 0 : index
    %c0_130 = arith.constant 0 : index
    %140 = vector.load %arg4[%c0_129, %c0_130] : memref<2x576xbf16, #tpu.memory_space<vmem>>, vector<2x576xbf16>
    %c0_131 = arith.constant 0 : index
    %c0_132 = arith.constant 0 : index
    %141 = vector.load %arg10[%c0_131, %c0_132] : memref<576x288xbf16, #tpu.memory_space<vmem>>, vector<576x288xbf16>
    %cst_133 = arith.constant dense<0.000000e+00> : vector<2x288xf32>
    %142 = tpu.matmul %140, %141, %cst_133 {dimension_numbers = #tpu.dot_dimension_numbers<[1], [0], [0], [1], [0, 0, 1, 1], [], []>} : vector<2x576xbf16>, vector<576x288xbf16>, vector<2x288xf32> -> vector<2x288xf32>
    %c0_134 = arith.constant 0 : index
    %c0_135 = arith.constant 0 : index
    %143 = vector.load %arg5[%c0_134, %c0_135] : memref<2x1xf32, #tpu.memory_space<vmem>>, vector<2x1xf32>
    %144 = vector.broadcast %143 : vector<2x1xf32> to vector<2x288xf32>
    %145 = arith.addf %142, %144 : vector<2x288xf32>
    %c0_136 = arith.constant 0 : index
    %c0_137 = arith.constant 0 : index
    %c0_138 = arith.constant 0 : index
    %146 = vector.load %arg6[%c0_136, %c0_137, %c0_138] : memref<1x2x288xf32, #tpu.memory_space<vmem>>, vector<1x2x288xf32>
    %147 = vector.shape_cast %146 : vector<1x2x288xf32> to vector<2x288xf32>
    %148 = vector.shape_cast %145 : vector<2x288xf32> to vector<1x2x288xf32>
    tpu.vector_store %arg6[%c0_136, %c0_137, %c0_138], %148 {strides = array<i32>} : memref<1x2x288xf32, #tpu.memory_space<vmem>>, vector<1x2x288xf32>,
    return
  }
  func.func @transform_0(%arg0: i32) -> (i32, i32, i32) {
    %c0_i32 = arith.constant 0 : i32
    %c0_i32_0 = arith.constant 0 : i32
    %c0_i32_1 = arith.constant 0 : i32
    return %arg0, %c0_i32, %c0_i32_0 : i32, i32, i32
  }
  func.func @transform_1(%arg0: i32) -> (i32, i32) {
    %c0_i32 = arith.constant 0 : i32
    %c0_i32_0 = arith.constant 0 : i32
    %c0_i32_1 = arith.constant 0 : i32
    return %c0_i32, %c0_i32_0 : i32, i32
  }
  func.func @transform_2(%arg0: i32) -> (i32, i32) {
    %c0_i32 = arith.constant 0 : i32
    %c0_i32_0 = arith.constant 0 : i32
    %c0_i32_1 = arith.constant 0 : i32
    return %c0_i32, %c0_i32_0 : i32, i32
  }
  func.func @transform_3(%arg0: i32) -> (i32, i32) {
    %c0_i32 = arith.constant 0 : i32
    %c0_i32_0 = arith.constant 0 : i32
    %c0_i32_1 = arith.constant 0 : i32
    return %c0_i32, %c0_i32_0 : i32, i32
  }
  func.func @transform_4(%arg0: i32) -> (i32, i32) {
    %c0_i32 = arith.constant 0 : i32
    %c0_i32_0 = arith.constant 0 : i32
    %c0_i32_1 = arith.constant 0 : i32
    return %c0_i32, %c0_i32_0 : i32, i32
  }
  func.func @transform_5(%arg0: i32) -> (i32, i32, i32) {
    %c0_i32 = arith.constant 0 : i32
    %c0_i32_0 = arith.constant 0 : i32
    %c0_i32_1 = arith.constant 0 : i32
    return %arg0, %c0_i32, %c0_i32_0 : i32, i32, i32
  }
}

</mosaic_0001>

<bundles_post_ra>
// kernel: tpu_custom_call.1
= control target key start
LH: loop header
LB: loop body
LE: loop exit
PB: predicated region body
PF: predicated region fallthrough
CT: control target
= control target key end

     0   :  { %10 = vsyncpa [#allocation7], 0  ;;  %s4395_s0 = inlined_call_operand.hbm [shape: f32[2,32,256], index: 0, kind: input, shape index: {}]   ;;  %s4396_s1 = inlined_call_operand.hbm [shape: bf16[64,288], index: 1, kind: input, shape index: {}]   ;;  %s4397_s2 = inlined_call_operand.vmem [shape: f32[64,1], index: 2, kind: input, shape index: {}]   ;;  %s4398_s3 = inlined_call_operand.vmem [shape: bf16[2,576], index: 3, kind: input, shape index: {}]   ;;  %s4399_s4 = inlined_call_operand.vmem [shape: f32[2,1], index: 4, kind: input, shape index: {}]   ;;  %s4400_s5 = inlined_call_operand.hbm [shape: f32[2,2,288], index: 5, kind: output, shape index: {}]  }
   0x1   :  { %12 = vsyncpa [#allocation7 + $0x1], 0 }
   0x2   :  { %13 = vsyncpa [#allocation10], 0 }
   0x3   :  { %14 = vsyncpa [#allocation8], 0 }
   0x4   :  { %16 = vsyncpa [#allocation8 + $0x1], 0  ;;  %s3304_s18 = smov 0   ;;  %s3306_s19 = smov 0  }
   0x5   :  { %s3308_s20 = smov 0   ;;  %s3310_s21 = smov 0  }
   0x6 LB: > { %s3325_s22 = sadd.s32 4294967295, %s3236_s21   ;;  %s2794_s23 = sadd.s32 4294967294, %s3236_s21   ;;  %s3236_s21 = sphi %s3310_s21, %s4456_s21   ;;  %s3232_s20 = sphi %s3308_s20, %s4455_s20   ;;  %s3228_s19 = sphi %s3306_s19, %s4454_s19   ;;  %s3224_s18 = sphi %s3304_s18, %s4453_s18  }
   0x7   : > { %p42_p0 = scmp.ne.s32.totalorder %s3228_s19, %s3224_s18  ;;  %p4401_p1 = scmp.eq.s32.totalorder %s3325_s22, 0 }
   0x8   : > { %p156_p3 = scmp.eq.s32.totalorder %s2794_s23, 1  ;;  %p2795_p5 = scmp.ge.s32.totalorder %s3236_s21, 1 }
   0x9   : > { %p3334_p4 = por %p4401_p1, %p42_p0  ;;  %p163_p7 = scmp.lt.s32.totalorder %s3236_s21, 3 }
   0xa   : > { %p3339_p6 = por %p156_p3, %p42_p0  ;;  %s3238_s27 = smov [#allocation9]  }
   0xb   : > { %s4410_s24 = scalar_select %p3334_p4, 1, 0 }
   0xc   : > { %s4411_s25 = scalar_select %p3339_p6, 1, 0 }
   0xd   : > { %p3344_p8 = pnand %p2795_p5, %p163_p7  ;;  %s175_s28 = sshll.u32 %s3238_s27, 4  ;;  %s3348_s28 = int_to_ptr.vmem [resolvable:$true] %s175_s28 }
   0xe   : > { %s3360_s30 = sadd.s32 1, %s3236_s21   ;;  %s29_s6 = sadd.s32 1, %s3232_s20 }
   0xf   : > { %s4412_s26 = scalar_select %p3344_p8, 1, 0 }
  0x10   : > { %p3007_p9 = pneg %p3344_p8  ;;  %s26_s7 = ssub.s32 %s3236_s21, %s3360_s30 }
  0x11   : > { %s3108_s10 = scalar_lea.hbm %s4396_s1, 1536 }
  0x12   : > { %p3355_p11 = pnand %p3007_p9, %p4401_p1  ;;  %p3109_p12 = scmp.ne.s32.totalorder %s4396_s1, %s3108_s10 }
  0x13   : > { %p3115_p5 = scmp.lt.u32.totalorder %s3108_s10, %s4396_s1 }
  0x14   : > { %p3110_p13 = pneg %p3355_p11 }
  0x16   : > { %p3111_p0 = pnand %p3110_p13, %p3109_p12 }
  0x18   : > { %p3112_p3 = pneg %p3111_p0 }
  0x1a   : > { %p3117_p7 = pnand %p3115_p5, %p3112_p3 }
  0x1c   : > { %3120 = shalt.err (!%p3117_p7)
}
  0x1d   : > { %s3121_s15 = scalar_lea.vmem %s3348_s28, 1536  ;;  %p3129_p2 = scmp.lt.s32.totalorder %s3348_s28, %s3348_s28 }
  0x1e   : > { %p3122_p9 = scmp.ne.s32.totalorder %s3348_s28, %s3121_s15  ;;  %p3130_p6 = scmp.lt.s32.totalorder %s3121_s15, %s3121_s15 }
  0x20   : > { %p3124_p10 = pnand %p3122_p9, %p3110_p13  ;;  %p3131_p4 = por %p3130_p6, %p3129_p2 }
  0x22   : > { %p3125_p1 = pneg %p3124_p10 }
  0x24   : > { %p3132_p8 = pnand %p3131_p4, %p3125_p1 }
  0x26   : > { %3135 = shalt.err (!%p3132_p8)
}
  0x27   : > { %s3239_s16 = smov 192   ;;  %s3240_s17 = smov 12  }
  0x28   : > { %3010 = dma.hbm_to_vmem [thread:$0]  (!%p3355_p11), %s4396_s1, 1536, %s3348_s28, [#allocation10], %s3239_s16, %s3239_s16, %s3240_s17  }
  0x29   : > { %p27_p2 = scmp.eq.s32.totalorder %s26_s7, 0  ;;  %p36_p1 = scmp.ne.s32.totalorder %s3232_s20, %s3228_s19 }
  0x2a   : > { %p37_p4 = scmp.eq.s32.totalorder %s3236_s21, 0  ;;  %p3020_p6 = scmp.lt.s32.totalorder %s3236_s21, 2 }
  0x2b   : > { %s3391_s8 = scalar_select %p27_p2, %s3232_s20, %s29_s6  }
  0x2c   : > { %p38_p8 = por %p37_p4, %p36_p1  ;;  %p4414_p10 = scmp.eq.s32.totalorder %s3325_s22, 1 }
  0x2d   : > { %s198_s10 = sand.u32 1, %s3232_s20   ;;  %s2829_s11 = sshll.u32 %s3236_s21, 10 }
  0x2e   : > { %p3395_p12 = por %p4414_p10, %p36_p1  ;;  %s2798_s12 = sshll.u32 %s198_s10, 6 }
  0x2f   : > { %s3404_s14 = scalar_lea.hbm %s4395_s0, %s2829_s11  ;;  %s202_s28 = scalar_lea.vmem [#allocation6], %s2798_s12 }
  0x30   : > { %s209_s6 = sshll.u32 %s202_s28, 4  ;;  %p3406_p11 = pnand %p3020_p6, %p38_p8  ;;  %s3410_s6 = int_to_ptr.vmem [resolvable:$true] %s209_s6 }
  0x31   : > { %s3412_s15 = scalar_lea.sflag [#allocation7], %s198_s10  ;;  %s3136_s16 = scalar_lea.hbm %s3404_s14, 1024 }
  0x32   : > { %p3137_p13 = scmp.ne.s32.totalorder %s3404_s14, %s3136_s16  ;;  %p3138_p0 = pneg %p3406_p11 }
  0x33   : > { %s3141_s27 = scalar_lea.hbm %s4395_s0, 2048  ;;  %p3142_p7 = scmp.lt.u32.totalorder %s3404_s14, %s4395_s0 }
  0x34   : > { %p3139_p3 = pnand %p3138_p0, %p3137_p13  ;;  %p3143_p9 = scmp.lt.u32.totalorder %s3141_s27, %s3136_s16 }
  0x35   : > { %p3145_p1 = scmp.lt.u32.totalorder %s3136_s16, %s3404_s14 }
  0x36   : > { %p3140_p5 = pneg %p3139_p3  ;;  %p3144_p2 = por %p3143_p9, %p3142_p7 }
  0x38   : > { %p3146_p4 = por %p3145_p1, %p3144_p2 }
  0x3a   : > { %p3147_p6 = pnand %p3146_p4, %p3140_p5 }
  0x3c   : > { %3150 = shalt.err (!%p3147_p6)
}
  0x3d   : > { %s3151_s10 = scalar_lea.vmem %s3410_s6, 1024  ;;  %s3241_s29 = smov [#allocation6]  }
  0x3e   : > { %p3152_p8 = scmp.ne.s32.totalorder %s3410_s6, %s3151_s10  ;;  %s3156_s13 = sshll.u32 %s3241_s29, 4  ;;  %s3157_s13 = int_to_ptr.vmem [resolvable:$false] %s3156_s13 }
  0x3f   : > { %s3158_s28 = scalar_lea.vmem %s3157_s13, 2048  ;;  %p3159_p3 = scmp.lt.s32.totalorder %s3410_s6, %s3157_s13 }
  0x40   : > { %p3154_p10 = pnand %p3152_p8, %p3138_p0  ;;  %p3160_p7 = scmp.lt.s32.totalorder %s3158_s28, %s3151_s10 }
  0x42   : > { %p3155_p13 = pneg %p3154_p10  ;;  %p3161_p9 = por %p3160_p7, %p3159_p3 }
  0x44   : > { %p3162_p2 = pnand %p3161_p9, %p3155_p13 }
  0x46   : > { %3165 = shalt.err (!%p3162_p2)
}
  0x47   : > { %s3242_s16 = smov 256   ;;  %s3243_s17 = smov 16  }
  0x48   : > { %3014 = dma.hbm_to_vmem [thread:$0]  (!%p3406_p11), %s3404_s14, 1024, %s3410_s6, %s3412_s15, %s3242_s16, %s3242_s16, %s3243_s17  }
  0x49   : > { %p4417_p0 = scmp.ne.s32.totalorder %s4412_s26, 0 }
  0x4a   : > { %s3443_s23 = sand.u32 (!%p4417_p0), 1, %s3228_s19   ;;  %p4418_p5 = scmp.ne.s32.totalorder (!%p4417_p0), %s4410_s24, 0 }
  0x4b   : > { %221 = sbr.rel (%p4417_p0) target bundleno = 1419 (0x58b), region = 40  ;;  %s2802_s27 = sshll.u32 (!%p4417_p0), %s3443_s23, 6 }
  0x4c   : > { %s224_s11 = scalar_lea.sflag (!%p4417_p0), [#allocation7], %s3443_s23  ;;  %s3447_s12 = scalar_lea.vmem (!%p4417_p0), [#allocation6], %s2802_s27 }
  0x52   : > { %3211 = dma.done.wait (%p4418_p5), %s224_s11, 1024  }
  0x53   : > { %3213 = vsyncadd (%p4418_p5), %s224_s11, 4294966272  ;;  %p4419_p11 = scmp.eq.s32.totalorder %s3325_s22, 0 }
  0x55   : > { %3215 = dma.done.wait (%p4419_p11), [#allocation10], 1536   ;;  %p4420_p1 = pmov %p4419_p11 }
  0x56   : > { %v3244_v0 = vmov 0   ;;  %v380_v1 = vld [vmem:[%s3447_s12] sm:$0xff]  ;;  %v381_v2 = vld [vmem:[%s3447_s12 + $0x10] sm:$0xff]  ;;  %v417_v3 = vld [vmem:[%s3447_s12 + $0x8] sm:$0xff]  ;;  %s3245_s24 = smov 31   ;;  %s3246_s26 = smov 19  }
  0x57   : > { %3217 = vsyncadd (%p4420_p1), [#allocation10], 4294965760  ;;  %260 = vst [vmem:[#allocation2 + $0x8] sm:$0xff] %v3244_v0  ;;  %3089 = vset.pattern.permute.xlu0 %v3244_v0  ;;  %3090 = vset.pattern.permute.xlu1 %v3244_v0  ;;  %v384_v4 = vpack.c.bf16 %v381_v2, %v380_v1  ;;  %v418_v5 = vld [vmem:[%s3447_s12 + $0x18] sm:$0xff]  ;;  %s3247_s14 = smov 33   ;;  %s3248_s6 = smov 35  }
  0x58   : > { %259 = vst [vmem:[#allocation2] sm:$0xff] %v3244_v0  ;;  %263 = vst [vmem:[#allocation2 + $0x18] sm:$0xff] %v3244_v0  ;;  %v421_v6 = vpack.c.bf16 %v418_v5, %v417_v3  ;;  %v382_v7 = vld [vmem:[%s3447_s12 + $0x20] sm:$0xff]  ;;  %v383_v8 = vld [vmem:[%s3447_s12 + $0x30] sm:$0xff]  ;;  %vm261_vm0 = vcmask 703488   ;;  %s3249_s7 = smov 21  }
  0x59   : > { %264 = vst [vmem:[#allocation2 + $0x20] sm:$0xff] %v3244_v0  ;;  %266 = vst [vmem:[#allocation3] sm:$0xff] %v3244_v0  ;;  %388 = vrot.lane.b32.xlu0 %v384_v4, %s3245_s24  ;;  %286 = vrot.lane.b32.xlu1 %v384_v4, %s3246_s26  ;;  %s3250_s15 = smov 37   ;;  %v385_v9 = vpack.c.bf16 %v383_v8, %v382_v7  ;;  %s3251_s10 = smov 23   ;;  %v419_v10 = vld [vmem:[%s3447_s12 + $0x28] sm:$0xff]  ;;  %v420_v11 = vld [vmem:[%s3447_s12 + $0x38] sm:$0xff] }
  0x5a   : > { %269 = vst [vmem:[#allocation3 + $0x18] sm:$0xff] %v3244_v0  ;;  %272 = vst [vmem:[#allocation3 + $0x30] sm:$0xff] %v3244_v0  ;;  %s3252_s29 = smov 39   ;;  %s3253_s13 = smov 25   ;;  %v422_v12 = vpack.c.bf16 %v420_v11, %v419_v10  ;;  %vm396_vm1 = vcmask 121856   ;;  %vm292_vm2 = vcmask 285848  }
  0x5b   : > { %275 = vst [vmem:[#allocation3 + $0x48] sm:$0xff] %v3244_v0  ;;  %262 = vst.msk [vmem:[#allocation2 + $0x10] sm:$0xff] %vm261_vm0, %v3244_v0  ;;  %s3254_s28 = smov 41   ;;  %s3255_s16 = smov 45   ;;  %vm414_vm3 = vcmask 269448   ;;  %vm431_vm4 = vcmask 417048  }
  0x5c   : > { %265 = vst.msk [vmem:[#allocation2 + $0x28] sm:$0xff] %vm261_vm0, %v3244_v0  ;;  %268 = vst.msk [vmem:[#allocation3 + $0x10] sm:$0xff] %vm261_vm0, %v3244_v0  ;;  %s3256_s17 = smov 27   ;;  %s3257_s27 = smov 43   ;;  %vm309_vm5 = vcmask 433448   ;;  %vm448_vm6 = vcmask 564648  }
  0x5d   : > { %408 = vrot.lane.b32.xlu0 %v384_v4, %s3247_s14  ;;  %425 = vrot.lane.b32.xlu1 %v421_v6, %s3248_s6  ;;  %271 = vst.msk [vmem:[#allocation3 + $0x28] sm:$0xff] %vm261_vm0, %v3244_v0  ;;  %274 = vst.msk [vmem:[#allocation3 + $0x40] sm:$0xff] %vm261_vm0, %v3244_v0  ;;  %s3258_s11 = smov 47   ;;  %s3260_s12 = smov 49   ;;  %vm326_vm7 = vcmask 581048   ;;  %vm465_vm8 = vcmask 712248  }
  0x5e   : > { %277 = vst.msk [vmem:[#allocation3 + $0x58] sm:$0xff] %vm261_vm0, %v3244_v0  ;;  %vm343_vm9 = vcmask 728648   ;;  %vm482_vm10 = vcmask 859848   ;;  %vm518_vm11 = vcmask 105472   ;;  %vm360_vm12 = vcmask 876248   ;;  %v967_v5 = vld [vmem:[%s4397_s2] sm:$0xff] }
  0x5f   : > { %vm499_vm13 = vcmask 1007448   ;;  %vm536_vm14 = vcmask 253048   ;;  %vm516_vm15 = vcmask 1048552   ;;  %vm377_vm0 = vcmask 1023848   ;;  %v3093_v51 = vld [vmem:[#allocation9 + $0x4] ss:$12 sps:$4 sm:$0xff]  }
  0x60   : > { %1265 = vmatprep.mubr.bf16.mxu1 %v3093_v51  ;;  %1119 = vmatprep.mubr.bf16.mxu0 %v3093_v51  ;;  %v970_v10 = vld [vmem:[%s4397_s2 + $0x18] sm:$0xff] }
  0x61   : > { %303 = vrot.lane.b32.xlu0 %v384_v4, %s3249_s7  ;;  %442 = vrot.lane.b32.xlu1 %v421_v6, %s3250_s15 }
  0x65   : > { %320 = vrot.lane.b32.xlu0 %v384_v4, %s3251_s10  ;;  %390 = vrot.lane.b32.xlu1 %v385_v9, %s3245_s24  ;;  %s3259_s24 = smov 29  }
  0x69   : > { %459 = vrot.lane.b32.xlu0 %v421_v6, %s3252_s29  ;;  %337 = vrot.lane.b32.xlu1 %v384_v4, %s3253_s13 }
  0x6d   : > { %410 = vrot.lane.b32.xlu0 %v385_v9, %s3247_s14  ;;  %476 = vrot.lane.b32.xlu1 %v421_v6, %s3254_s28  ;;  %s3261_s14 = smov 127  }
  0x71   : > { %510 = vrot.lane.b32.xlu0 %v421_v6, %s3255_s16  ;;  %288 = vrot.lane.b32.xlu1 %v385_v9, %s3246_s26 }
  0x75   : > { %354 = vrot.lane.b32.xlu0 %v384_v4, %s3256_s17  ;;  %427 = vrot.lane.b32.xlu1 %v422_v12, %s3248_s6  ;;  %s3262_s6 = smov 126  }
  0x79   : > { %493 = vrot.lane.b32.xlu0 %v421_v6, %s3257_s27  ;;  %530 = vrot.lane.b32.xlu1 %v421_v6, %s3258_s11 }
  0x7d   : > { %305 = vrot.lane.b32.xlu0 %v385_v9, %s3249_s7  ;;  %371 = vrot.lane.b32.xlu1 %v384_v4, %s3259_s24  ;;  %s3263_s7 = smov 110  }
  0x81   : > { %444 = vrot.lane.b32.xlu0 %v422_v12, %s3250_s15  ;;  %547 = vrot.lane.b32.xlu1 %v421_v6, %s3260_s12  ;;  %s3264_s15 = smov 109   ;;  %v968_v6 = vld [vmem:[%s4397_s2 + $0x8] sm:$0xff] }
  0x85   : > { %322 = vrot.lane.b32.xlu0 %v385_v9, %s3251_s10  ;;  %461 = vrot.lane.b32.xlu1 %v422_v12, %s3252_s29  ;;  %s3265_s10 = smov 108   ;;  %s3266_s29 = smov 92  }
  0x89   : > { %339 = vrot.lane.b32.xlu0 %v385_v9, %s3253_s13  ;;  %478 = vrot.lane.b32.xlu1 %v422_v12, %s3254_s28  ;;  %s4406_s13 = smov 91   ;;  %s4404_s28 = smov 90  }
  0x8d   : > { %512 = vrot.lane.b32.xlu0 %v422_v12, %s3255_s16  ;;  %356 = vrot.lane.b32.xlu1 %v385_v9, %s3256_s17  ;;  %s2998_s16 = smul.u32 96, %s3325_s22  ;;  %s2700_s22 = scalar_lea.sflag [#allocation8], %s3443_s23 }
  0x91   : > { %495 = vrot.lane.b32.xlu0 %v422_v12, %s3257_s27  ;;  %532 = vrot.lane.b32.xlu1 %v422_v12, %s3258_s11 }
  0x95   : > { %373 = vrot.lane.b32.xlu0 %v385_v9, %s3259_s24  ;;  %549 = vrot.lane.b32.xlu1 %v422_v12, %s3260_s12  ;;  %v969_v9 = vld [vmem:[%s4397_s2 + $0x10] sm:$0xff]  ;;  %s3273_s12 = smov [#allocation11]  }
  0xcb   : > { %v389_v13 = vpop.permute.xlu0 %388  ;;  %v287_v14 = vpop.permute.xlu1 %286 }
  0xcc   : > { %397 = vst.msk [vmem:[#allocation2 + $0x8] sm:$0xff] %vm396_vm1, %v389_v13 }
  0xcd   : > { %293 = vst.msk [vmem:[#allocation2] sm:$0xff] %vm292_vm2, %v287_v14  ;;  %v972_v14 = vld [vmem:[%s4397_s2 + $0x28] sm:$0xff] }
  0xcf   : > { %v409_v15 = vpop.permute.xlu0 %408  ;;  %v426_v16 = vpop.permute.xlu1 %425 }
  0xd0   : > { %415 = vst.msk [vmem:[#allocation2 + $0x8] sm:$0xff] %vm414_vm3, %v409_v15 }
  0xd1   : > { %432 = vst.msk [vmem:[#allocation2 + $0x8] sm:$0xff] %vm431_vm4, %v426_v16 }
  0xd3   : > { %v304_v17 = vpop.permute.xlu0 %303  ;;  %v443_v18 = vpop.permute.xlu1 %442 }
  0xd4   : > { %310 = vst.msk [vmem:[#allocation2] sm:$0xff] %vm309_vm5, %v304_v17 }
  0xd5   : > { %449 = vst.msk [vmem:[#allocation2 + $0x8] sm:$0xff] %vm448_vm6, %v443_v18 }
  0xd7   : > { %v321_v19 = vpop.permute.xlu0 %320  ;;  %v3495_v20 = vpop.permute.xlu1 %390 }
  0xd8   : > { %327 = vst.msk [vmem:[#allocation2] sm:$0xff] %vm326_vm7, %v321_v19  ;;  %v973_v19 = vld [vmem:[%s4397_s2 + $0x30] sm:$0xff] }
  0xd9   : > { %399 = vst.msk [vmem:[#allocation2 + $0x20] sm:$0xff] %vm396_vm1, %v3495_v20  ;;  %vm394_vm1 = vcmask 1048568  }
  0xdb   : > { %v460_v21 = vpop.permute.xlu0 %459  ;;  %v338_v22 = vpop.permute.xlu1 %337 }
  0xdc   : > { %466 = vst.msk [vmem:[#allocation2 + $0x8] sm:$0xff] %vm465_vm8, %v460_v21 }
  0xdd   : > { %344 = vst.msk [vmem:[#allocation2] sm:$0xff] %vm343_vm9, %v338_v22 }
  0xdf   : > { %v411_v23 = vpop.permute.xlu0 %410  ;;  %v477_v24 = vpop.permute.xlu1 %476 }
  0xe0   : > { %416 = vst.msk [vmem:[#allocation2 + $0x20] sm:$0xff] %vm414_vm3, %v411_v23  ;;  %vm564_vm3 = vcmask 261120  }
  0xe1   : > { %483 = vst.msk [vmem:[#allocation2 + $0x8] sm:$0xff] %vm482_vm10, %v477_v24 }
  0xe3   : > { %v511_v25 = vpop.permute.xlu0 %510  ;;  %v289_v26 = vpop.permute.xlu1 %288 }
  0xe4   : > { %519 = vst.msk [vmem:[#allocation2 + $0x10] sm:$0xff] %vm518_vm11, %v511_v25 }
  0xe5   : > { %294 = vst.msk [vmem:[#allocation2 + $0x18] sm:$0xff] %vm292_vm2, %v289_v26  ;;  %vm553_vm2 = vcmask 400648  }
  0xe7   : > { %v355_v27 = vpop.permute.xlu0 %354  ;;  %v428_v28 = vpop.permute.xlu1 %427 }
  0xe8   : > { %361 = vst.msk [vmem:[#allocation2] sm:$0xff] %vm360_vm12, %v355_v27 }
  0xe9   : > { %433 = vst.msk [vmem:[#allocation2 + $0x20] sm:$0xff] %vm431_vm4, %v428_v28  ;;  %vm593_vm4 = vcmask 1039360  }
  0xeb   : > { %v494_v29 = vpop.permute.xlu0 %493  ;;  %v531_v30 = vpop.permute.xlu1 %530 }
  0xec   : > { %500 = vst.msk [vmem:[#allocation2 + $0x8] sm:$0xff] %vm499_vm13, %v494_v29 }
  0xed   : > { %537 = vst.msk [vmem:[#allocation2 + $0x10] sm:$0xff] %vm536_vm14, %v531_v30 }
  0xee   : > { %517 = vst.msk [vmem:[#allocation2 + $0x8] sm:$0xff] %vm516_vm15, %v511_v25 }
  0xef   : > { %v306_v31 = vpop.permute.xlu0 %305  ;;  %v372_v32 = vpop.permute.xlu1 %371 }
  0xf0   : > { %311 = vst.msk [vmem:[#allocation2 + $0x18] sm:$0xff] %vm309_vm5, %v306_v31  ;;  %vm634_vm5 = vcmask 1031168  }
  0xf1   : > { %378 = vst.msk [vmem:[#allocation2] sm:$0xff] %vm377_vm0, %v372_v32 }
  0xf2   : > { %395 = vst.msk [vmem:[#allocation2] sm:$0xff] %vm394_vm1, %v389_v13  ;;  %v971_v13 = vld [vmem:[%s4397_s2 + $0x20] sm:$0xff] }
  0xf3   : > { %v445_v33 = vpop.permute.xlu0 %444  ;;  %v548_v34 = vpop.permute.xlu1 %547 }
  0xf4   : > { %450 = vst.msk [vmem:[#allocation2 + $0x20] sm:$0xff] %vm448_vm6, %v445_v33  ;;  %vm675_vm6 = vcmask 900096  }
  0xf5   : > { %554 = vst.msk [vmem:[#allocation2 + $0x10] sm:$0xff] %vm553_vm2, %v548_v34  ;;  %v3516_v35 = vld [vmem:[#allocation2 + $0x8] sm:$0xff] }
  0xf6   : > { %1087 = vmatprep.subr.bf16.mxu0 %v3516_v35 }
  0xf7   : > { %v323_v36 = vpop.permute.xlu0 %322  ;;  %v462_v37 = vpop.permute.xlu1 %461 }
  0xf8   : > { %328 = vst.msk [vmem:[#allocation2 + $0x18] sm:$0xff] %vm326_vm7, %v323_v36  ;;  %vm716_vm7 = vcmask 891904  }
  0xf9   : > { %467 = vst.msk [vmem:[#allocation2 + $0x20] sm:$0xff] %vm465_vm8, %v462_v37  ;;  %v3521_v38 = vld [vmem:[#allocation2] sm:$0xff]  ;;  %vm757_vm8 = vcmask 883712  }
  0xfa   : > { %1088 = vmatpush1.bf16.msra.mxu0 %v3521_v38 }
  0xfb   : > { %v340_v39 = vpop.permute.xlu0 %339  ;;  %v479_v40 = vpop.permute.xlu1 %478 }
  0xfc   : > { %v3524_v41 = vld [vmem:[#allocation2 + $0x10] sm:$0xff]  ;;  %345 = vst.msk [vmem:[#allocation2 + $0x18] sm:$0xff] %vm343_vm9, %v340_v39  ;;  %vm798_vm9 = vcmask 752640  }
  0xfd   : > { %484 = vst.msk [vmem:[#allocation2 + $0x20] sm:$0xff] %vm482_vm10, %v479_v40  ;;  %585 = vrot.lane.b32.xlu1 %v3524_v41, %s3261_s14  ;;  %vm4409_vm10 = vcmask 744448  }
  0xfe   : > { %565 = vst.msk [vmem:[#allocation4 + $0x10] sm:$0xff] %vm564_vm3, %v3524_v41 }
  0xff   : > { %v513_v42 = vpop.permute.xlu0 %512  ;;  %v357_v43 = vpop.permute.xlu1 %356 }
 0x100   : > { %521 = vst.msk [vmem:[#allocation2 + $0x28] sm:$0xff] %vm518_vm11, %v513_v42  ;;  %vm4408_vm11 = vcmask 736256  }
 0x101   : > { %362 = vst.msk [vmem:[#allocation2 + $0x18] sm:$0xff] %vm360_vm12, %v357_v43  ;;  %626 = vrot.lane.b32.xlu1 %v3524_v41, %s3262_s6 }
 0x103   : > { %v496_v44 = vpop.permute.xlu0 %495  ;;  %v533_v45 = vpop.permute.xlu1 %532 }
 0x104   : > { %501 = vst.msk [vmem:[#allocation2 + $0x20] sm:$0xff] %vm499_vm13, %v496_v44 }
 0x105   : > { %538 = vst.msk [vmem:[#allocation2 + $0x28] sm:$0xff] %vm536_vm14, %v533_v45  ;;  %667 = vrot.lane.b32.xlu1 %v3524_v41, %s3263_s7  ;;  %v915_v59 = vld [vmem:[#allocation4 + $0x10] sm:$0xff] }
 0x106   : > { %520 = vst.msk [vmem:[#allocation2 + $0x20] sm:$0xff] %vm516_vm15, %v513_v42 }
 0x107   : > { %v374_v46 = vpop.permute.xlu0 %373  ;;  %v550_v47 = vpop.permute.xlu1 %549 }
 0x108   : > { %379 = vst.msk [vmem:[#allocation2 + $0x18] sm:$0xff] %vm377_vm0, %v374_v46 }
 0x109   : > { %555 = vst.msk [vmem:[#allocation2 + $0x28] sm:$0xff] %vm553_vm2, %v550_v47  ;;  %708 = vrot.lane.b32.xlu1 %v3524_v41, %s3264_s15 }
 0x10a   : > { %398 = vst.msk [vmem:[#allocation2 + $0x18] sm:$0xff] %vm394_vm1, %v3495_v20  ;;  %v974_v20 = vld [vmem:[%s4397_s2 + $0x38] sm:$0xff] }
 0x10d   : > { %v560_v48 = vld [vmem:[#allocation2 + $0x20] sm:$0xff] }
 0x10e   : > { %1089 = vmatprep.subr.bf16.mxu0 %v560_v48 }
 0x110   : > { %v561_v49 = vld [vmem:[#allocation2 + $0x28] sm:$0xff] }
 0x111   : > { %591 = vrot.lane.b32.xlu0 %v561_v49, %s3261_s14  ;;  %v572_v50 = vld [vmem:[#allocation2 + $0x18] sm:$0xff]  ;;  %568 = vst.msk [vmem:[#allocation4 + $0x28] sm:$0xff] %vm564_vm3, %v561_v49 }
 0x112   : > { %587 = vrot.lane.b32.xlu1 %v572_v50, %s3261_s14  ;;  %1090 = vmatpush1.bf16.msra.mxu0 %v572_v50 }
 0x115   : > { %632 = vrot.lane.b32.xlu0 %v561_v49, %s3262_s6 }
 0x116   : > { %628 = vrot.lane.b32.xlu1 %v572_v50, %s3262_s6 }
 0x119   : > { %673 = vrot.lane.b32.xlu0 %v561_v49, %s3263_s7 }
 0x11a   : > { %669 = vrot.lane.b32.xlu1 %v572_v50, %s3263_s7 }
 0x11d   : > { %581 = vrot.lane.b32.xlu0 %v3521_v38, %s3261_s14 }
 0x11e   : > { %589 = vrot.lane.b32.xlu1 %v560_v48, %s3261_s14 }
 0x121   : > { %622 = vrot.lane.b32.xlu0 %v3521_v38, %s3262_s6 }
 0x122   : > { %710 = vrot.lane.b32.xlu1 %v572_v50, %s3264_s15 }
 0x125   : > { %663 = vrot.lane.b32.xlu0 %v3521_v38, %s3263_s7 }
 0x126   : > { %630 = vrot.lane.b32.xlu1 %v560_v48, %s3262_s6 }
 0x129   : > { %704 = vrot.lane.b32.xlu0 %v3521_v38, %s3264_s15 }
 0x12a   : > { %749 = vrot.lane.b32.xlu1 %v3524_v41, %s3265_s10 }
 0x12d   : > { %583 = vrot.lane.b32.xlu0 %v3516_v35, %s3261_s14 }
 0x12e   : > { %671 = vrot.lane.b32.xlu1 %v560_v48, %s3263_s7 }
 0x131   : > { %714 = vrot.lane.b32.xlu0 %v561_v49, %s3264_s15 }
 0x132   : > { %751 = vrot.lane.b32.xlu1 %v572_v50, %s3265_s10 }
 0x135   : > { %624 = vrot.lane.b32.xlu0 %v3516_v35, %s3262_s6 }
 0x136   : > { %712 = vrot.lane.b32.xlu1 %v560_v48, %s3264_s15 }
 0x139   : > { %745 = vrot.lane.b32.xlu0 %v3521_v38, %s3265_s10 }
 0x13a   : > { %790 = vrot.lane.b32.xlu1 %v3524_v41, %s3266_s29 }
 0x13d   : > { %665 = vrot.lane.b32.xlu0 %v3516_v35, %s3263_s7 }
 0x13e   : > { %753 = vrot.lane.b32.xlu1 %v560_v48, %s3265_s10 }
 0x141   : > { %755 = vrot.lane.b32.xlu0 %v561_v49, %s3265_s10 }
 0x142   : > { %792 = vrot.lane.b32.xlu1 %v572_v50, %s3266_s29 }
 0x145   : > { %706 = vrot.lane.b32.xlu0 %v3516_v35, %s3264_s15 }
 0x146   : > { %794 = vrot.lane.b32.xlu1 %v560_v48, %s3266_s29 }
 0x149   : > { %786 = vrot.lane.b32.xlu0 %v3521_v38, %s3266_s29 }
 0x14a   : > { %831 = vrot.lane.b32.xlu1 %v3524_v41, %s4406_s13 }
 0x14d   : > { %747 = vrot.lane.b32.xlu0 %v3516_v35, %s3265_s10 }
 0x14e   : > { %835 = vrot.lane.b32.xlu1 %v560_v48, %s4406_s13 }
 0x151   : > { %796 = vrot.lane.b32.xlu0 %v561_v49, %s3266_s29 }
 0x152   : > { %833 = vrot.lane.b32.xlu1 %v572_v50, %s4406_s13 }
 0x155   : > { %788 = vrot.lane.b32.xlu0 %v3516_v35, %s3266_s29 }
 0x156   : > { %872 = vrot.lane.b32.xlu1 %v3524_v41, %s4404_s28 }
 0x159   : > { %827 = vrot.lane.b32.xlu0 %v3521_v38, %s4406_s13 }
 0x15a   : > { %876 = vrot.lane.b32.xlu1 %v560_v48, %s4404_s28 }
 0x15d   : > { %829 = vrot.lane.b32.xlu0 %v3516_v35, %s4406_s13 }
 0x15e   : > { %874 = vrot.lane.b32.xlu1 %v572_v50, %s4404_s28 }
 0x161   : > { %837 = vrot.lane.b32.xlu0 %v561_v49, %s4406_s13 }
 0x162   : > { %982 = vperm.xlu1 %3090, %v968_v6  }
 0x165   : > { %870 = vrot.lane.b32.xlu0 %v3516_v35, %s4404_s28 }
 0x166   : > { %987 = vperm.xlu1 %3090, %v969_v9  }
 0x169   : > { %868 = vrot.lane.b32.xlu0 %v3521_v38, %s4404_s28  ;;  %v918_v38 = vld [vmem:[#allocation4 + $0x28] sm:$0xff] }
 0x16a   : > { %997 = vperm.xlu1 %3090, %v971_v13  }
 0x16d   : > { %878 = vrot.lane.b32.xlu0 %v561_v49, %s4404_s28  ;;  %s4351_s28 = scalar_lea.hbm %s4400_s5, %s2998_s16 }
 0x16e   : > { %1007 = vperm.xlu1 %3090, %v973_v19  }
 0x16f   : > { %v586_v52 = vpop.permute.xlu1 %585 }
 0x170   : > { %606 = vst.msk [vmem:[#allocation4 + $0x40] sm:$0xff] %vm564_vm3, %v586_v52 }
 0x171   : > { %977 = vperm.xlu0 %3089, %v967_v5  }
 0x173   : > { %v3613_v53 = vpop.permute.xlu1 %626 }
 0x174   : > { %647 = vst.msk [vmem:[#allocation4 + $0x70] sm:$0xff] %vm564_vm3, %v3613_v53 }
 0x175   : > { %992 = vperm.xlu0 %3089, %v970_v10  }
 0x177   : > { %v3617_v54 = vpop.permute.xlu1 %667  ;;  %v921_v44 = vld [vmem:[#allocation4 + $0x40] sm:$0xff] }
 0x178   : > { %688 = vst.msk [vmem:[#allocation4 + $0xa0] sm:$0xff] %vm564_vm3, %v3617_v54 }
 0x179   : > { %1002 = vperm.xlu0 %3089, %v972_v14  }
 0x17b   : > { %v3621_v55 = vpop.permute.xlu1 %708 }
 0x17c   : > { %729 = vst.msk [vmem:[#allocation4 + $0xd0] sm:$0xff] %vm564_vm3, %v3621_v55 }
 0x17d   : > { %1012 = vperm.xlu0 %3089, %v974_v20  }
 0x183   : > { %v592_v56 = vpop.permute.xlu0 %591  ;;  %v939_v57 = vld [vmem:[#allocation4 + $0xd0] sm:$0xff] }
 0x184   : > { %609 = vst.msk [vmem:[#allocation4 + $0x58] sm:$0xff] %vm564_vm3, %v592_v56  ;;  %2830 = vmatprep.subr.bf16.mxu1 %v939_v57  ;;  %v588_v58 = vpop.permute.xlu1 %587 }
 0x185   : > { %2831 = vmatpush3.bf16.msra.mxu1 %v915_v59 }
 0x187   : > { %v633_v60 = vpop.permute.xlu0 %632 }
 0x188   : > { %650 = vst.msk [vmem:[#allocation4 + $0x88] sm:$0xff] %vm564_vm3, %v633_v60  ;;  %v629_v61 = vpop.permute.xlu1 %628 }
 0x18b   : > { %v674_v62 = vpop.permute.xlu0 %673 }
 0x18c   : > { %691 = vst.msk [vmem:[#allocation4 + $0xb8] sm:$0xff] %vm564_vm3, %v674_v62  ;;  %v670_v63 = vpop.permute.xlu1 %669 }
 0x18f   : > { %v582_v1 = vpop.permute.xlu0 %581 }
 0x190   : > { %v590_v2 = vpop.permute.xlu1 %589 }
 0x191   : > { %v596_v3 = vsel %vm593_vm4, %v588_v58, %v590_v2  ;;  %v597_v4 = vsel %vm593_vm4, %v590_v2, %v592_v56  ;;  %v924_v58 = vld [vmem:[#allocation4 + $0x58] sm:$0xff] }
 0x193   : > { %v623_v7 = vpop.permute.xlu0 %622 }
 0x194   : > { %v711_v8 = vpop.permute.xlu1 %710 }
 0x197   : > { %v664_v11 = vpop.permute.xlu0 %663 }
 0x198   : > { %v631_v12 = vpop.permute.xlu1 %630 }
 0x199   : > { %v637_v15 = vsel %vm634_vm5, %v629_v61, %v631_v12  ;;  %v638_v16 = vsel %vm634_vm5, %v631_v12, %v633_v60  ;;  %v930_v12 = vld [vmem:[#allocation4 + $0x88] sm:$0xff] }
 0x19b   : > { %v705_v17 = vpop.permute.xlu0 %704 }
 0x19c   : > { %v3650_v18 = vpop.permute.xlu1 %749 }
 0x19d   : > { %770 = vst.msk [vmem:[#allocation4 + $0x100] sm:$0xff] %vm564_vm3, %v3650_v18 }
 0x19f   : > { %v584_v21 = vpop.permute.xlu0 %583 }
 0x1a0   : > { %v594_v22 = vsel %vm593_vm4, %v582_v1, %v584_v21  ;;  %v595_v23 = vsel %vm593_vm4, %v584_v21, %v586_v52  ;;  %v672_v24 = vpop.permute.xlu1 %671 }
 0x1a1   : > { %v678_v25 = vsel %vm675_vm6, %v670_v63, %v672_v24  ;;  %v679_v26 = vsel %vm675_vm6, %v672_v24, %v674_v62  ;;  %1091 = vmatprep.subr.bf16.mxu0 %v595_v23  ;;  %v927_v63 = vld [vmem:[#allocation4 + $0x70] sm:$0xff]  ;;  %v3094_v23 = vld [vmem:[#allocation9 + $0x1c] ss:$12 sps:$4 sm:$0xff]  }
 0x1a2   : > { %1092 = vmatpush1.bf16.msra.mxu0 %v594_v22  ;;  %v3091_v22 = vld [vmem:[#allocation9] ss:$12 sps:$4 sm:$0xff]  }
 0x1a3   : > { %v715_v27 = vpop.permute.xlu0 %714  ;;  %1093 = vmatprep.subr.bf16.mxu0 %v597_v4 }
 0x1a4   : > { %732 = vst.msk [vmem:[#allocation4 + $0xe8] sm:$0xff] %vm564_vm3, %v715_v27  ;;  %v752_v28 = vpop.permute.xlu1 %751  ;;  %v945_v39 = vld [vmem:[#allocation4 + $0x100] sm:$0xff] }
 0x1a6   : > { %1094 = vmatpush1.bf16.msra.mxu0 %v596_v3 }
 0x1a7   : > { %v625_v29 = vpop.permute.xlu0 %624 }
 0x1a8   : > { %v635_v30 = vsel %vm634_vm5, %v623_v7, %v625_v29  ;;  %v636_v31 = vsel %vm634_vm5, %v625_v29, %v3613_v53  ;;  %v713_v32 = vpop.permute.xlu1 %712  ;;  %v936_v29 = vld [vmem:[#allocation4 + $0xb8] sm:$0xff] }
 0x1a9   : > { %v719_v33 = vsel %vm716_vm7, %v711_v8, %v713_v32  ;;  %v720_v34 = vsel %vm716_vm7, %v713_v32, %v715_v27  ;;  %1095 = vmatprep.subr.bf16.mxu0 %v636_v31  ;;  %v3096_v31 = vld [vmem:[#allocation9 + $0x18] ss:$12 sps:$4 sm:$0xff]  }
 0x1aa   : > { %1096 = vmatpush1.bf16.msra.mxu0 %v635_v30 }
 0x1ab   : > { %v746_v35 = vpop.permute.xlu0 %745  ;;  %v942_v36 = vld [vmem:[#allocation4 + $0xe8] sm:$0xff]  ;;  %1097 = vmatprep.subr.bf16.mxu0 %v638_v16 }
 0x1ac   : > { %v791_v37 = vpop.permute.xlu1 %790  ;;  %2832 = vmatprep.subr.bf16.mxu1 %v942_v36 }
 0x1ad   : > { %811 = vst.msk [vmem:[#allocation4 + $0x130] sm:$0xff] %vm564_vm3, %v791_v37  ;;  %2833 = vmatpush3.bf16.msra.mxu1 %v918_v38  ;;  %v3102_v38 = vld [vmem:[#allocation9 + $0x48] ss:$12 sps:$4 sm:$0xff]  }
 0x1ae   : > { %2834 = vmatprep.subr.bf16.mxu1 %v945_v39  ;;  %1098 = vmatpush1.bf16.msra.mxu0 %v637_v15  ;;  %v3103_v39 = vld [vmem:[#allocation9 + $0x8] ss:$12 sps:$4 sm:$0xff]  }
 0x1af   : > { %v666_v40 = vpop.permute.xlu0 %665 }
 0x1b0   : > { %v676_v41 = vsel %vm675_vm6, %v664_v11, %v666_v40  ;;  %v677_v42 = vsel %vm675_vm6, %v666_v40, %v3617_v54  ;;  %v754_v43 = vpop.permute.xlu1 %753  ;;  %v3104_v40 = vld [vmem:[#allocation9 + $0x20] ss:$12 sps:$4 sm:$0xff]  }
 0x1b1   : > { %v760_v45 = vsel %vm757_vm8, %v752_v28, %v754_v43  ;;  %2835 = vmatpush3.bf16.msra.mxu1 %v921_v44  ;;  %1099 = vmatprep.subr.bf16.mxu0 %v677_v42  ;;  %v3106_v42 = vld [vmem:[#allocation9 + $0x50] ss:$12 sps:$4 sm:$0xff]  }
 0x1b2   : > { %1100 = vmatpush1.bf16.msra.mxu0 %v676_v41  ;;  %v3105_v41 = vld [vmem:[#allocation9 + $0x38] ss:$12 sps:$4 sm:$0xff]  }
 0x1b3   : > { %v756_v46 = vpop.permute.xlu0 %755  ;;  %1101 = vmatprep.subr.bf16.mxu0 %v679_v26 }
 0x1b4   : > { %v761_v47 = vsel %vm757_vm8, %v754_v43, %v756_v46  ;;  %773 = vst.msk [vmem:[#allocation4 + $0x118] sm:$0xff] %vm564_vm3, %v756_v46  ;;  %v793_v48 = vpop.permute.xlu1 %792  ;;  %v951_v59 = vld [vmem:[#allocation4 + $0x130] sm:$0xff]  ;;  %v1435_v43 = vlaneseq }
 0x1b6   : > { %1102 = vmatpush1.bf16.msra.mxu0 %v678_v25  ;;  %v1436_v44 = vand.u32 127, %v1435_v43 }
 0x1b7   : > { %v707_v49 = vpop.permute.xlu0 %706 }
 0x1b8   : > { %v717_v50 = vsel %vm716_vm7, %v705_v17, %v707_v49  ;;  %v718_v51 = vsel %vm716_vm7, %v707_v49, %v3621_v55  ;;  %v795_v52 = vpop.permute.xlu1 %794  ;;  %v1438_v46 = vadd.s32 256, %v1436_v44 }
 0x1b9   : > { %v801_v53 = vsel %vm798_vm9, %v793_v48, %v795_v52  ;;  %1103 = vmatprep.subr.bf16.mxu0 %v718_v51 }
 0x1ba   : > { %1104 = vmatpush1.bf16.msra.mxu0 %v717_v50  ;;  %v3716_v49 = vmul.u32.u64.low 3817748708, %v1436_v44  ;;  %v3717_v50 = vmul.u32.u64.high 3817748708, %v1436_v44, %v3716_v49 }
 0x1bb   : > { %v787_v54 = vpop.permute.xlu0 %786  ;;  %v948_v56 = vld [vmem:[#allocation4 + $0x118] sm:$0xff]  ;;  %1105 = vmatprep.subr.bf16.mxu0 %v720_v34 }
 0x1bc   : > { %v832_v57 = vpop.permute.xlu1 %831  ;;  %2836 = vmatprep.subr.bf16.mxu1 %v948_v56 }
 0x1bd   : > { %852 = vst.msk [vmem:[#allocation4 + $0x160] sm:$0xff] %vm564_vm3, %v832_v57  ;;  %2837 = vmatpush3.bf16.msra.mxu1 %v924_v58 }
 0x1be   : > { %2838 = vmatprep.subr.bf16.mxu1 %v951_v59  ;;  %1106 = vmatpush1.bf16.msra.mxu0 %v719_v33  ;;  %v3097_v33 = vld [vmem:[#allocation9 + $0x34] ss:$12 sps:$4 sm:$0xff]  }
 0x1bf   : > { %v748_v60 = vpop.permute.xlu0 %747 }
 0x1c0   : > { %v758_v55 = vsel %vm757_vm8, %v746_v35, %v748_v60  ;;  %v759_v61 = vsel %vm757_vm8, %v748_v60, %v3650_v18  ;;  %v836_v62 = vpop.permute.xlu1 %835  ;;  %v933_v18 = vld [vmem:[#allocation4 + $0xa0] sm:$0xff] }
 0x1c1   : > { %2839 = vmatpush3.bf16.msra.mxu1 %v927_v63  ;;  %1107 = vmatprep.subr.bf16.mxu0 %v759_v61  ;;  %v3099_v35 = vld [vmem:[#allocation9 + $0x30] ss:$12 sps:$4 sm:$0xff]  }
 0x1c2   : > { %1108 = vmatpush1.bf16.msra.mxu0 %v758_v55  ;;  %v1445_v55 = vshrl.u32 %v3717_v50, 4 }
 0x1c3   : > { %v797_v1 = vpop.permute.xlu0 %796  ;;  %1109 = vmatprep.subr.bf16.mxu0 %v761_v47 }
 0x1c4   : > { %v802_v2 = vsel %vm798_vm9, %v795_v52, %v797_v1  ;;  %814 = vst.msk [vmem:[#allocation4 + $0x148] sm:$0xff] %vm564_vm3, %v797_v1  ;;  %v834_v3 = vpop.permute.xlu1 %833  ;;  %v957_v13 = vld [vmem:[#allocation4 + $0x160] sm:$0xff]  ;;  %v3719_v51 = vmul.u32.u64.low 3817748708, %v1438_v46  ;;  %v3720_v52 = vmul.u32.u64.high 3817748708, %v1438_v46, %v3719_v51 }
 0x1c5   : > { %v842_v4 = vsel %vm4409_vm10, %v834_v3, %v836_v62 }
 0x1c6   : > { %1110 = vmatpush1.bf16.msra.mxu0 %v760_v45  ;;  %v1437_v45 = vadd.s32 128, %v1436_v44  ;;  %v1467_v61 = vshrl.u32 %v3720_v52, 4 }
 0x1c7   : > { %v789_v5 = vpop.permute.xlu0 %788 }
 0x1c8   : > { %v799_v6 = vsel %vm798_vm9, %v787_v54, %v789_v5  ;;  %v800_v7 = vsel %vm798_vm9, %v789_v5, %v791_v37  ;;  %v873_v8 = vpop.permute.xlu1 %872  ;;  %v3100_v37 = vld [vmem:[#allocation9 + $0x4c] ss:$12 sps:$4 sm:$0xff]   ;;  %v3713_v47 = vmul.u32.u64.low 3817748708, %v1437_v45  ;;  %v3714_v48 = vmul.u32.u64.high 3817748708, %v1437_v45, %v3713_v47 }
 0x1c9   : > { %893 = vst.msk [vmem:[#allocation4 + $0x190] sm:$0xff] %vm564_vm3, %v873_v8  ;;  %1111 = vmatprep.subr.bf16.mxu0 %v800_v7 }
 0x1ca   : > { %1112 = vmatpush1.bf16.msra.mxu0 %v799_v6  ;;  %v1456_v60 = vshrl.u32 %v3714_v48, 4  ;;  %v1468_v6 = vmul.u32 18, %v1467_v61 }
 0x1cb   : > { %v828_v9 = vpop.permute.xlu0 %827  ;;  %v954_v10 = vld [vmem:[#allocation4 + $0x148] sm:$0xff]  ;;  %1113 = vmatprep.subr.bf16.mxu0 %v802_v2 }
 0x1cc   : > { %v877_v11 = vpop.permute.xlu1 %876  ;;  %2840 = vmatprep.subr.bf16.mxu1 %v954_v10  ;;  %v1457_v1 = vmul.u32 18, %v1456_v60  ;;  %v1469_v10 = vsub.s32 %v1438_v46, %v1468_v6 }
 0x1cd   : > { %2841 = vmatpush3.bf16.msra.mxu1 %v930_v12 }
 0x1ce   : > { %2842 = vmatprep.subr.bf16.mxu1 %v957_v13  ;;  %1114 = vmatpush1.bf16.msra.mxu0 %v801_v53  ;;  %vm1474_vm0 = vcmp.ne.s32.totalorder %v1469_v10, 0  ;;  %vm1477_vm1 = vcmp.lt.s32.totalorder %v1469_v10, 0 }
 0x1cf   : > { %v830_v14 = vpop.permute.xlu0 %829 }
 0x1d0   : > { %v840_v15 = vsel %vm4409_vm10, %v828_v9, %v830_v14  ;;  %v841_v16 = vsel %vm4409_vm10, %v830_v14, %v832_v57  ;;  %v875_v17 = vpop.permute.xlu1 %874  ;;  %v963_v30 = vld [vmem:[#allocation4 + $0x190] sm:$0xff] }
 0x1d1   : > { %v883_v19 = vsel %vm4408_vm11, %v875_v17, %v877_v11  ;;  %2843 = vmatpush3.bf16.msra.mxu1 %v933_v18  ;;  %1115 = vmatprep.subr.bf16.mxu0 %v841_v16 }
 0x1d2   : > { %1116 = vmatpush1.bf16.msra.mxu0 %v840_v15 }
 0x1d3   : > { %v838_v20 = vpop.permute.xlu0 %837 }
 0x1d4   : > { %v843_v21 = vsel %vm4409_vm10, %v836_v62, %v838_v20  ;;  %855 = vst.msk [vmem:[#allocation4 + $0x178] sm:$0xff] %vm564_vm3, %v838_v20  ;;  %vm3737_vm10 = vmand %vm1477_vm1, %vm1474_vm0 }
 0x1d5   : > { %1117 = vmatprep.subr.bf16.mxu0 %v843_v21 }
 0x1d6   : > { %1118 = vmatpush1.bf16.msra.mxu0 %v842_v4  ;;  %v1446_v4 = vmul.u32 18, %v1445_v55 }
 0x1d7   : > { %v871_v24 = vpop.permute.xlu0 %870 }
 0x1d8   : > { %v882_v25 = vsel %vm4408_vm11, %v871_v24, %v873_v8  ;;  %v1458_v8 = vsub.s32 %v1437_v45, %v1457_v1  ;;  %v1447_v9 = vsub.s32 %v1436_v44, %v1446_v4 }
 0x1d9   : > { %1120 = vmatmul.mubr.bf16.vlgmr.msra.gmra.mrb[0].mxu0 %v3091_v22  ;;  %1160 = vmatprep.subr.bf16.mxu0 %v882_v25  ;;  %v1483_v25 = vadd.s32 18, %v1469_v10 }
 0x1da   : > { %1129 = vmatprep.mubr.bf16.mxu0 %v3094_v23  ;;  %vm1473_vm12 = vcmp.ne.s32.totalorder %v1458_v8, 0  ;;  %vm1476_vm13 = vcmp.lt.s32.totalorder %v1458_v8, 0  ;;  %vm1472_vm14 = vcmp.ne.s32.totalorder %v1447_v9, 0  ;;  %vm1475_vm15 = vcmp.lt.s32.totalorder %v1447_v9, 0 }
 0x1db   : > { %v869_v26 = vpop.permute.xlu0 %868  ;;  %v960_v27 = vld [vmem:[#allocation4 + $0x178] sm:$0xff]  ;;  %vm3727_vm2 = vmand %vm1476_vm13, %vm1473_vm12  ;;  %v1482_v21 = vadd.s32 18, %v1458_v8 }
 0x1dc   : > { %v881_v28 = vsel %vm4408_vm11, %v869_v26, %v871_v24  ;;  %2844 = vmatprep.subr.bf16.mxu1 %v960_v27 }
 0x1dd   : > { %2845 = vmatpush3.bf16.msra.mxu1 %v936_v29  ;;  %1161 = vmatpush1.bf16.msra.mxu0 %v881_v28  ;;  %v1485_v29 = vsel %vm3727_vm2, %v1482_v21, %v1458_v8 }
 0x1de   : > { %2925 = vmatprep.subr.bf16.mxu1 %v963_v30  ;;  %vm3751_vm12 = vcmp.lt.s32.totalorder %v1485_v29, 16 }
 0x1df   : > { %v879_v32 = vpop.permute.xlu0 %878 }
 0x1e0   : > { %v884_v34 = vsel %vm4408_vm11, %v877_v11, %v879_v32  ;;  %896 = vst.msk [vmem:[#allocation4 + $0x1a8] sm:$0xff] %vm564_vm3, %v879_v32  ;;  %1266 = vmatmul.mubr.bf16.vlgmr.msra.gmra.mrb[0].mxu1 %v3091_v22  ;;  %v1481_v22 = vadd.s32 18, %v1447_v9  ;;  %vm3733_vm11 = vmand %vm1475_vm15, %vm1472_vm14 }
 0x1e1   : > { %2926 = vmatpush3.bf16.msra.mxu1 %v963_v30  ;;  %1273 = vmatprep.mubr.bf16.mxu1 %v3094_v23  ;;  %v983_v11 = vpop.permute.xlu1 %982 }
 0x1e2   : > { %1130 = vmatmul.mubr.bf16.gmra.mrb[4].mxu0 %v3096_v31  ;;  %1162 = vmatprep.subr.bf16.mxu0 %v884_v34  ;;  %v1484_v30 = vsel %vm3733_vm11, %v1481_v22, %v1447_v9 }
 0x1e3   : > { %1163 = vmatpush1.bf16.msra.mxu0 %v883_v19  ;;  %1139 = vmatprep.mubr.bf16.mxu0 %v3097_v33  ;;  %vm3755_vm13 = vcmp.lt.s32.totalorder %v1484_v30, 16 }
 0x1e5   : > { %v3725_v18 = vpop.permute.xlu1 %987 }
 0x1e7   : > { %v966_v36 = vld [vmem:[#allocation4 + $0x1a8] sm:$0xff] }
 0x1e8   : > { %1274 = vmatmul.mubr.bf16.gmra.mrb[4].mxu1 %v3096_v31  ;;  %2927 = vmatprep.subr.bf16.mxu1 %v966_v36 }
 0x1e9   : > { %2928 = vmatpush3.bf16.msra.mxu1 %v966_v36  ;;  %1281 = vmatprep.mubr.bf16.mxu1 %v3097_v33  ;;  %v3741_v27 = vpop.permute.xlu1 %997  ;;  %v1486_v36 = vsel %vm3737_vm10, %v1483_v25, %v1469_v10 }
 0x1ea   : > { %1140 = vmatmul.mubr.bf16.gmra.mrb[8].mxu0 %v3099_v35  ;;  %vm3760_vm10 = vcmp.lt.s32.totalorder %v1486_v36, 16 }
 0x1eb   : > { %1149 = vmatprep.mubr.bf16.mxu0 %v3100_v37 }
 0x1f0   : > { %1282 = vmatmul.mubr.bf16.gmra.mrb[8].mxu1 %v3099_v35  ;;  %v978_v13 = vpop.permute.xlu0 %977 }
 0x1f1   : > { %1289 = vmatprep.mubr.bf16.mxu1 %v3100_v37 }
 0x1f2   : > { %1150 = vmatmul.mubr.bf16.gmra.mrb[12].mxu0 %v3102_v38 }
 0x1f3   : > { %1192 = vmatprep.mubr.bf16.mxu0 %v3244_v0 }
 0x1f4   : > { %v3731_v23 = vpop.permute.xlu0 %992 }
 0x1f8   : > { %1290 = vmatmul.mubr.bf16.gmra.mrb[12].mxu1 %v3102_v38  ;;  %v3747_v31 = vpop.permute.xlu0 %1002 }
 0x1f9   : > { %2929 = vmatprep.mubr.msk.bf16.mxu1 %vm564_vm3, %v3103_v39 }
 0x1fa   : > { %2816 = vmatmul.mubr.msk.bf16.vlgmr.msra.gmra.mrb[0].mxu0 %vm564_vm3, %v3103_v39 }
 0x1fb   : > { %1202 = vmatprep.mubr.bf16.mxu0 %v3244_v0 }
 0x200   : > { %2930 = vmatmul.mubr.msk.bf16.vlgmr.msra.gmra.mrb[16].mxu1 %vm564_vm3, %v3104_v40 }
 0x201   : > { %2933 = vmatprep.mubr.msk.bf16.mxu1 %vm564_vm3, %v3105_v41 }
 0x202   : > { %2817 = vmatmul.mubr.msk.bf16.gmra.mrb[4].mxu0 %vm564_vm3, %v3104_v40 }
 0x203   : > { %1212 = vmatprep.mubr.bf16.mxu0 %v3244_v0 }
 0x208   : > { %2934 = vmatmul.mubr.msk.bf16.gmra.mrb[20].mxu1 %vm564_vm3, %v3106_v42 }
 0x20a   : > { %2818 = vmatmul.mubr.msk.bf16.gmra.mrb[8].mxu0 %vm564_vm3, %v3105_v41 }
 0x20b   : > { %1222 = vmatprep.mubr.bf16.mxu0 %v3244_v0 }
 0x212   : > { %2819 = vmatmul.mubr.msk.bf16.gmra.mrb[12].mxu0 %vm564_vm3, %v3106_v42 }
 0x2b3   : > { %v2846_v53 = vpop.f32.mrb[0].mxu1 }
 0x2b4   : > { %v2847_v54 = vpop.f32.mrb[1].mxu1 }
 0x2b5   : > { %v2848_v56 = vadd.f32 %v2847_v54, %v2846_v53  ;;  %v2849_v57 = vpop.f32.mrb[2].mxu1  ;;  %v3764_v53 = vpop.permute.xlu1 %1007 }
 0x2b6   : > { %v2850_v58 = vpop.f32.mrb[3].mxu1  ;;  %v3766_v54 = vpop.permute.xlu0 %1012 }
 0x2b7   : > { %v2851_v59 = vadd.f32 %v2850_v58, %v2849_v57  ;;  %v1268_v44 = vadd.f32 %v2848_v56, %v978_v13 }
 0x2b9   : > { %v1271_v47 = vadd.f32 %v2851_v59, %v983_v11 }
 0x2bb   : > { %v2852_v62 = vpop.f32.mrb[4].mxu1 }
 0x2bc   : > { %v2853_v63 = vpop.f32.mrb[5].mxu1 }
 0x2bd   : > { %v2854_v2 = vadd.f32 %v2853_v63, %v2852_v62  ;;  %v2855_v3 = vpop.f32.mrb[6].mxu1 }
 0x2be   : > { %v2856_v5 = vpop.f32.mrb[7].mxu1 }
 0x2bf   : > { %v2857_v7 = vadd.f32 %v2856_v5, %v2855_v3  ;;  %v1276_v48 = vadd.f32 %v2854_v2, %v3725_v18 }
 0x2c1   : > { %v1279_v56 = vadd.f32 %v2857_v7, %v3731_v23 }
 0x2c3   : > { %v2858_v12 = vpop.f32.mrb[8].mxu1 }
 0x2c4   : > { %v2859_v14 = vpop.f32.mrb[9].mxu1 }
 0x2c5   : > { %v2860_v15 = vadd.f32 %v2859_v14, %v2858_v12  ;;  %v2861_v16 = vpop.f32.mrb[10].mxu1 }
 0x2c6   : > { %v2862_v17 = vpop.f32.mrb[11].mxu1 }
 0x2c7   : > { %v2863_v19 = vadd.f32 %v2862_v17, %v2861_v16  ;;  %v1284_v55 = vadd.f32 %v2860_v15, %v3741_v27 }
 0x2c9   : > { %v3775_v1 = vadd.f32 %v2863_v19, %v3747_v31 }
 0x2cb   : > { %v2864_v28 = vpop.f32.mrb[12].mxu1 }
 0x2cc   : > { %v2865_v32 = vpop.f32.mrb[13].mxu1 }
 0x2cd   : > { %v2866_v33 = vadd.f32 %v2865_v32, %v2864_v28  ;;  %v2867_v34 = vpop.f32.mrb[14].mxu1  ;;  %v1194_v35 = vpop.f32.mrb[0].mxu0 }
 0x2ce   : > { %v2868_v37 = vpop.f32.mrb[15].mxu1  ;;  %v2949_v38 = vadd.f32 %v1194_v35, %v978_v13  ;;  %v1196_v39 = vpop.f32.mrb[1].mxu0 }
 0x2cf   : > { %v2869_v42 = vadd.f32 %v2868_v37, %v2867_v34  ;;  %v2950_v45 = vadd.f32 %v1196_v39, %v978_v13  ;;  %v1198_v46 = vpop.f32.mrb[2].mxu0  ;;  %v1292_v4 = vadd.f32 %v2866_v33, %v3764_v53 }
 0x2d0   : > { %vm1363_vm11 = vcmp.gt.f32.partialorder %v2949_v38, 0.0  ;;  %v1387_v49 = vmul.f32 0.1, %v2949_v38  ;;  %v2951_v50 = vadd.f32 %v1198_v46, %v983_v11  ;;  %v1200_v51 = vpop.f32.mrb[3].mxu0 }
 0x2d1   : > { %vm1364_vm14 = vcmp.gt.f32.partialorder %v2950_v45, 0.0  ;;  %v1388_v57 = vmul.f32 0.1, %v2950_v45  ;;  %v2952_v58 = vadd.f32 %v1200_v51, %v983_v11  ;;  %v1295_v5 = vadd.f32 %v2869_v42, %v3766_v54 }
 0x2d2   : > { %v3769_v59 = vsel %vm1363_vm11, %v2949_v38, %v1387_v49  ;;  %vm1366_vm15 = vcmp.gt.f32.partialorder %v2951_v50, 0.0  ;;  %v1390_v60 = vmul.f32 0.1, %v2951_v50 }
 0x2d3   : > { %v2931_v61 = vpop.f32.mrb[16].mxu1  ;;  %v3772_v62 = vsel %vm1364_vm14, %v2950_v45, %v1388_v57  ;;  %vm1367_vm0 = vcmp.gt.f32.partialorder %v2952_v58, 0.0  ;;  %v1391_v63 = vmul.f32 0.1, %v2952_v58  ;;  %v1496_v6 = vsel %vm3755_vm13, %v3769_v59, 0.0 }
 0x2d4   : > { %v1341_v2 = vadd.f32 %v2931_v61, %v1276_v48  ;;  %v1332_v3 = vpop.f32.mrb[17].mxu1  ;;  %v3782_v9 = vsel %vm1366_vm15, %v2951_v50, %v1390_v60  ;;  %v1497_v12 = vsel %vm3751_vm12, %v3772_v62, 0.0 }
 0x2d5   : > { %v1333_v7 = vadd.f32 %v1332_v3, %v1268_v44  ;;  %v2932_v8 = vpop.f32.mrb[18].mxu1  ;;  %v3784_v10 = vsel %vm1367_vm0, %v2952_v58, %v1391_v63  ;;  %v1204_v11 = vpop.f32.mrb[4].mxu0  ;;  %v1499_v34 = vsel %vm3755_vm13, %v3782_v9, 0.0 }
 0x2d6   : > { %vm1371_vm1 = vcmp.gt.f32.partialorder %v1341_v2, 0.0  ;;  %v1395_v13 = vmul.f32 0.1, %v1341_v2  ;;  %v1344_v14 = vadd.f32 %v2932_v8, %v1279_v56  ;;  %v1335_v15 = vpop.f32.mrb[19].mxu1  ;;  %v2953_v16 = vadd.f32 %v1204_v11, %v3725_v18  ;;  %v1206_v17 = vpop.f32.mrb[5].mxu0 }
 0x2d7   : > { %vm1365_vm2 = vcmp.gt.f32.partialorder %v1333_v7, 0.0  ;;  %v1389_v19 = vmul.f32 0.1, %v1333_v7  ;;  %v1336_v20 = vadd.f32 %v1335_v15, %v1271_v47  ;;  %v2954_v21 = vadd.f32 %v1206_v17, %v3725_v18  ;;  %v1208_v22 = vpop.f32.mrb[6].mxu0 }
 0x2d8   : > { %v1419_v24 = vsel %vm1371_vm1, %v1341_v2, %v1395_v13  ;;  %vm1374_vm11 = vcmp.gt.f32.partialorder %v1344_v14, 0.0  ;;  %v1398_v25 = vmul.f32 0.1, %v1344_v14  ;;  %vm1369_vm14 = vcmp.gt.f32.partialorder %v2953_v16, 0.0  ;;  %v1210_v26 = vpop.f32.mrb[7].mxu0 }
 0x2d9   : > { %v1413_v28 = vsel %vm1365_vm2, %v1333_v7, %v1389_v19  ;;  %vm1368_vm15 = vcmp.gt.f32.partialorder %v1336_v20, 0.0  ;;  %v1392_v29 = vmul.f32 0.1, %v1336_v20  ;;  %v1393_v30 = vmul.f32 0.1, %v2953_v16 }
 0x2da   : > { %v1422_v32 = vsel %vm1374_vm11, %v1344_v14, %v1398_v25  ;;  %vm1370_vm0 = vcmp.gt.f32.partialorder %v2954_v21, 0.0  ;;  %v1394_v33 = vmul.f32 0.1, %v2954_v21  ;;  %v1504_v18 = vsel %vm3760_vm10, %v1419_v24, 0.0 }
 0x2db   : > { %v1416_v35 = vsel %vm1368_vm15, %v1336_v20, %v1392_v29  ;;  %v2935_v36 = vpop.f32.mrb[20].mxu1  ;;  %v1507_v37 = vsel %vm3760_vm10, %v1422_v32, 0.0  ;;  %v2955_v38 = vadd.f32 %v1208_v22, %v3731_v23  ;;  %v3800_v42 = vsel %vm1369_vm14, %v2953_v16, %v1393_v30 }
 0x2dc   : > { %v1357_v39 = vadd.f32 %v2935_v36, %v1292_v4  ;;  %v1348_v44 = vpop.f32.mrb[21].mxu1  ;;  %v1525_v45 = vpack.c.bf16 %v1507_v37, %v1504_v18  ;;  %v1498_v46 = vsel %vm3760_vm10, %v1413_v28, 0.0  ;;  %v1501_v50 = vsel %vm3760_vm10, %v1416_v35, 0.0 }
 0x2dd   : > { %v1349_v47 = vadd.f32 %v1348_v44, %v1284_v55  ;;  %v2936_v48 = vpop.f32.mrb[22].mxu1  ;;  %vm1372_vm1 = vcmp.gt.f32.partialorder %v2955_v38, 0.0  ;;  %v1396_v49 = vmul.f32 0.1, %v2955_v38  ;;  %v1214_v51 = vpop.f32.mrb[8].mxu0  ;;  %v1522_v60 = vpack.c.bf16 %v1501_v50, %v1498_v46 }
 0x2de   : > { %vm1383_vm2 = vcmp.gt.f32.partialorder %v1357_v39, 0.0  ;;  %v1407_v57 = vmul.f32 0.1, %v1357_v39  ;;  %v1360_v56 = vadd.f32 %v2936_v48, %v1295_v5  ;;  %v1351_v58 = vpop.f32.mrb[23].mxu1  ;;  %1554 = vrot.lane.b32.xlu0 %v1525_v45, %s3246_s26  ;;  %v1216_v61 = vpop.f32.mrb[9].mxu0  ;;  %v3808_v2 = vsel %vm1370_vm0, %v2954_v21, %v1394_v33 }
 0x2df   : > { %vm1377_vm11 = vcmp.gt.f32.partialorder %v1349_v47, 0.0  ;;  %v1401_v63 = vmul.f32 0.1, %v1349_v47  ;;  %v1352_v55 = vadd.f32 %v1351_v58, %v3775_v1  ;;  %v1218_v3 = vpop.f32.mrb[10].mxu0  ;;  %v1420_v7 = vsel %vm1372_vm1, %v2955_v38, %v1396_v49  ;;  %1548 = vrot.lane.b32.xlu1 %v1522_v60, %s3246_s26 }
 0x2e0   : > { %vm1386_vm14 = vcmp.gt.f32.partialorder %v1360_v56, 0.0  ;;  %v1410_v4 = vmul.f32 0.1, %v1360_v56  ;;  %v2956_v5 = vadd.f32 %v1210_v26, %v3731_v23  ;;  %v1220_v8 = vpop.f32.mrb[11].mxu0  ;;  %v1431_v11 = vsel %vm1383_vm2, %v1357_v39, %v1407_v57 }
 0x2e1   : > { %vm1380_vm15 = vcmp.gt.f32.partialorder %v1352_v55, 0.0  ;;  %v1404_v13 = vmul.f32 0.1, %v1352_v55  ;;  %v2957_v14 = vadd.f32 %v1214_v51, %v3741_v27  ;;  %v2958_v1 = vadd.f32 %v1216_v61, %v3741_v27 }
 0x2e2   : > { %v1434_v15 = vsel %vm1386_vm14, %v1360_v56, %v1410_v4  ;;  %vm1373_vm0 = vcmp.gt.f32.partialorder %v2956_v5, 0.0  ;;  %v1397_v16 = vmul.f32 0.1, %v2956_v5  ;;  %v1425_v17 = vsel %vm1377_vm11, %v1349_v47, %v1401_v63 }
 0x2e3   : > { %v1428_v19 = vsel %vm1380_vm15, %v1352_v55, %v1404_v13  ;;  %vm1375_vm1 = vcmp.gt.f32.partialorder %v2957_v14, 0.0  ;;  %v1399_v20 = vmul.f32 0.1, %v2957_v14  ;;  %v1400_v22 = vmul.f32 0.1, %v2958_v1 }
 0x2e4   : > { %v1421_v21 = vsel %vm1373_vm0, %v2956_v5, %v1397_v16  ;;  %v1516_v23 = vsel %vm3760_vm10, %v1431_v11, 0.0  ;;  %v1519_v24 = vsel %vm3760_vm10, %v1434_v15, 0.0  ;;  %vm1376_vm2 = vcmp.gt.f32.partialorder %v2958_v1, 0.0 }
 0x2e5   : > { %v1423_v25 = vsel %vm1375_vm1, %v2957_v14, %v1399_v20  ;;  %v1531_v26 = vpack.c.bf16 %v1519_v24, %v1516_v23  ;;  %v2959_v28 = vadd.f32 %v1218_v3, %v3747_v31  ;;  %v1224_v29 = vpop.f32.mrb[12].mxu0  ;;  %v1510_v27 = vsel %vm3760_vm10, %v1425_v17, 0.0 }
 0x2e6   : > { %v1513_v30 = vsel %vm3760_vm10, %v1428_v19, 0.0  ;;  %v2960_v32 = vadd.f32 %v1220_v8, %v3747_v31  ;;  %v1500_v33 = vsel %vm3751_vm12, %v3784_v10, 0.0  ;;  %v1226_v35 = vpop.f32.mrb[13].mxu0  ;;  %v1424_v52 = vsel %vm1376_vm2, %v2958_v1, %v1400_v22 }
 0x2e7   : > { %1566 = vrot.lane.b32.xlu0 %v1531_v26, %s3246_s26  ;;  %vm1378_vm11 = vcmp.gt.f32.partialorder %v2959_v28, 0.0  ;;  %v1402_v36 = vmul.f32 0.1, %v2959_v28  ;;  %v1528_v18 = vpack.c.bf16 %v1513_v30, %v1510_v27  ;;  %v1521_v37 = vpack.c.bf16 %v1500_v33, %v1497_v12  ;;  %v1228_v38 = vpop.f32.mrb[14].mxu0 }
 0x2e8   : > { %v1403_v39 = vmul.f32 0.1, %v2960_v32  ;;  %v1520_v31 = vpack.c.bf16 %v1499_v34, %v1496_v6  ;;  %v2961_v10 = vadd.f32 %v1224_v29, %v3764_v53  ;;  %v1230_v44 = vpop.f32.mrb[15].mxu0  ;;  %vm1379_vm10 = vcmp.gt.f32.partialorder %v2960_v32, 0.0 }
 0x2e9   : > { %v1426_v45 = vsel %vm1378_vm11, %v2959_v28, %v1402_v36  ;;  %1560 = vrot.lane.b32.xlu1 %v1528_v18, %s3246_s26  ;;  %v2962_v62 = vadd.f32 %v1226_v35, %v3764_v53  ;;  %v2963_v12 = vadd.f32 %v1228_v38, %v3766_v54  ;;  %v1502_v59 = vsel %vm3755_vm13, %v3800_v42, 0.0 }
 0x2ea   : > { %vm1381_vm14 = vcmp.gt.f32.partialorder %v2961_v10, 0.0  ;;  %v1405_v46 = vmul.f32 0.1, %v2961_v10  ;;  %v1505_v6 = vsel %vm3755_vm13, %v1420_v7, 0.0  ;;  %v1427_v47 = vsel %vm1379_vm10, %v2960_v32, %v1403_v39 }
 0x2eb   : > { %1546 = vrot.lane.b32.xlu0 %v1521_v37, %s3246_s26  ;;  %vm1382_vm15 = vcmp.gt.f32.partialorder %v2962_v62, 0.0  ;;  %v1406_v9 = vmul.f32 0.1, %v2962_v62  ;;  %vm1384_vm0 = vcmp.gt.f32.partialorder %v2963_v12, 0.0  ;;  %v1408_v34 = vmul.f32 0.1, %v2963_v12 }
 0x2ec   : > { %v1429_v48 = vsel %vm1381_vm14, %v2961_v10, %v1405_v46  ;;  %v1523_v53 = vpack.c.bf16 %v1505_v6, %v1502_v59  ;;  %v2964_v49 = vadd.f32 %v1230_v44, %v3766_v54  ;;  %v1503_v51 = vsel %vm3751_vm12, %v3808_v2, 0.0 }
 0x2ed   : > { %1544 = vrot.lane.b32.xlu1 %v1520_v31, %s3246_s26  ;;  %v1514_v50 = vsel %vm3755_vm13, %v1429_v48, 0.0  ;;  %v1432_v42 = vsel %vm1384_vm0, %v2963_v12, %v1408_v34  ;;  %v1506_v57 = vsel %vm3751_vm12, %v1421_v21, 0.0  ;;  %v1430_v56 = vsel %vm1382_vm15, %v2962_v62, %v1406_v9  ;;  %v4057_v62 = vld [vmem:[%s4398_s3] sm:$0x1f] }
 0x2ee   : > { %v1517_v58 = vsel %vm3755_vm13, %v1432_v42, 0.0  ;;  %vm1385_vm1 = vcmp.gt.f32.partialorder %v2964_v49, 0.0  ;;  %v1409_v60 = vmul.f32 0.1, %v2964_v49  ;;  %v1524_v61 = vpack.c.bf16 %v1506_v57, %v1503_v51 }
 0x2ef   : > { %v1529_v54 = vpack.c.bf16 %v1517_v58, %v1514_v50  ;;  %1550 = vrot.lane.b32.xlu0 %v1523_v53, %s3246_s26  ;;  %v1509_v63 = vsel %vm3751_vm12, %v1424_v52, 0.0  ;;  %v1512_v55 = vsel %vm3751_vm12, %v1427_v47, 0.0  ;;  %v1508_v4 = vsel %vm3755_vm13, %v1423_v25, 0.0 }
 0x2f0   : > { %v1433_v2 = vsel %vm1385_vm1, %v2964_v49, %v1409_v60  ;;  %v1527_v3 = vpack.c.bf16 %v1512_v55, %v1509_v63  ;;  %v1511_v7 = vsel %vm3755_vm13, %v1426_v45, 0.0  ;;  %v1515_v5 = vsel %vm3751_vm12, %v1430_v56, 0.0 }
 0x2f1   : > { %v1518_v8 = vsel %vm3751_vm12, %v1433_v2, 0.0  ;;  %1552 = vrot.lane.b32.xlu1 %v1524_v61, %s3246_s26  ;;  %v1526_v11 = vpack.c.bf16 %v1511_v7, %v1508_v4  ;;  %vm1568_vm13 = vcmask 154624   ;;  %vm1592_vm2 = vcmask 416768  }
 0x2f2   : > { %v1530_v13 = vpack.c.bf16 %v1518_v8, %v1515_v5  ;;  %vm1589_vm12 = vcmask 1047704   ;;  %v3269_v31 = vmov 1966171168   ;;  %v4048_v44 = vshrl.u32 %v1435_v43, 7 }
 0x2f3   : > { %1558 = vrot.lane.b32.xlu0 %v1527_v3, %s3246_s26  ;;  %v2385_v10 = vunpack.c.l.s4 %v3269_v31  ;;  %vm4441_vm10 = vcmask 736256  }
 0x2f4   : > { %vm4443_vm14 = vmmov %vm4441_vm10 }
 0x2f5   : > { %1556 = vrot.lane.b32.xlu1 %v1526_v11, %s3246_s26  ;;  %v2386_v45 = vunpack.c.0.s8 %v2385_v10  ;;  %vm4445_vm0 = vmmov %vm4441_vm10 }
 0x2f6   : > { %vm4446_vm1 = vmmov %vm4445_vm0 }
 0x2f7   : > { %1562 = vrot.lane.b32.xlu0 %v1529_v54, %s3246_s26  ;;  %v4060_v12 = vsub.s32 %v2386_v45, %v4048_v44 }
 0x2f9   : > { %1564 = vrot.lane.b32.xlu1 %v1530_v13, %s3246_s26  ;;  %v4066_v43 = vrot.slane %v4057_v62, %v4060_v12  ;;  %s3170_s26 = sshll.u32 %s3273_s12, 4  ;;  %s3171_s26 = int_to_ptr.vmem [resolvable:$false] %s3170_s26 }
 0x2fb   : > { %v2398_v59 = vcombine.high %v4066_v43, %v4066_v43 }
 0x2fd   : > { %v4076_v9 = vrot.slane %v2398_v59, %v4060_v12 }
 0x2ff   : > { %2585 = vmatprep.mubr.bf16.mxu0 %v4076_v9  ;;  %2462 = vmatprep.mubr.bf16.mxu1 %v4076_v9 }
 0x350   : > { %v1555_v41 = vpop.permute.xlu0 %1554 }
 0x351   : > { %v1549_v14 = vpop.permute.xlu1 %1548 }
 0x359   : > { %v1567_v15 = vpop.permute.xlu0 %1566 }
 0x35b   : > { %v1561_v16 = vpop.permute.xlu1 %1560 }
 0x35d   : > { %v1547_v40 = vpop.permute.xlu0 %1546 }
 0x35e   : > { %v1570_v1 = vsel %vm1568_vm13, %v1547_v40, %v1549_v14 }
 0x35f   : > { %1593 = vst.msk [vmem:[#allocation3 + $0x10] sm:$0xff] %vm1592_vm2, %v1570_v1  ;;  %v1545_v17 = vpop.permute.xlu1 %1544 }
 0x360   : > { %v3886_v19 = vsel %vm1568_vm13, %v1545_v17, %v1547_v40  ;;  %1590 = vst.msk [vmem:[#allocation3] sm:$0xff] %vm1589_vm12, %v1545_v17 }
 0x361   : > { %v1551_v20 = vpop.permute.xlu0 %1550  ;;  %2430 = vmatprep.subr.bf16.mxu1 %v3886_v19 }
 0x362   : > { %1594 = vst.msk [vmem:[#allocation3 + $0x18] sm:$0xff] %vm1589_vm12, %v1551_v20 }
 0x363   : > { %v1553_v21 = vpop.permute.xlu1 %1552 }
 0x364   : > { %v3892_v22 = vsel %vm1568_vm13, %v1551_v20, %v1553_v21  ;;  %v1572_v23 = vsel %vm1568_vm13, %v1553_v21, %v1555_v41 }
 0x365   : > { %1596 = vst.msk [vmem:[#allocation3 + $0x28] sm:$0xff] %vm1592_vm2, %v1572_v23  ;;  %v1559_v24 = vpop.permute.xlu0 %1558 }
 0x366   : > { %v1574_v25 = vsel %vm1568_vm13, %v1559_v24, %v1561_v16  ;;  %v3897_v26 = vld [vmem:[#allocation3 + $0x10] sm:$0xff] }
 0x367   : > { %v3899_v28 = vld [vmem:[#allocation3] sm:$0xff]  ;;  %1599 = vst.msk [vmem:[#allocation3 + $0x40] sm:$0xff] %vm1592_vm2, %v1574_v25  ;;  %v1557_v29 = vpop.permute.xlu1 %1556  ;;  %1655 = vrot.lane.b32.xlu0 %v3897_v26, %s3261_s14 }
 0x368   : > { %1617 = vst.msk [vmem:[#allocation5 + $0x10] sm:$0xff] %vm564_vm3, %v3897_v26  ;;  %v3907_v27 = vsel %vm1568_vm13, %v1557_v29, %v1559_v24  ;;  %1651 = vrot.lane.b32.xlu1 %v3899_v28, %s3261_s14  ;;  %2431 = vmatpush1.bf16.msra.mxu1 %v3899_v28 }
 0x369   : > { %1597 = vst.msk [vmem:[#allocation3 + $0x30] sm:$0xff] %vm1589_vm12, %v1557_v29  ;;  %v3913_v30 = vld [vmem:[#allocation3 + $0x18] sm:$0xff]  ;;  %v1563_v32 = vpop.permute.xlu0 %1562  ;;  %2432 = vmatprep.subr.bf16.mxu1 %v3892_v22 }
 0x36a   : > { %1600 = vst.msk [vmem:[#allocation3 + $0x48] sm:$0xff] %vm1589_vm12, %v1563_v32  ;;  %vm3271_vm12 = vmmov 0  }
 0x36b   : > { %1735 = vrot.lane.b32.xlu0 %v3897_v26, %s3262_s6  ;;  %v1565_v33 = vpop.permute.xlu1 %1564 }
 0x36c   : > { %1731 = vrot.lane.b32.xlu1 %v3899_v28, %s3262_s6  ;;  %v3922_v35 = vsel %vm1568_vm13, %v1563_v32, %v1565_v33  ;;  %v1576_v36 = vsel %vm1568_vm13, %v1565_v33, %v1567_v15  ;;  %2433 = vmatpush1.bf16.msra.mxu1 %v3913_v30  ;;  %v3926_v18 = vld [vmem:[#allocation3 + $0x28] sm:$0xff]  ;;  %vm4447_vm13 = vmmov %vm4445_vm0 }
 0x36d   : > { %1602 = vst.msk [vmem:[#allocation3 + $0x58] sm:$0xff] %vm1592_vm2, %v1576_v36  ;;  %2434 = vmatprep.subr.bf16.mxu1 %v3907_v27  ;;  %vm4448_vm2 = vmmov %vm4445_vm0 }
 0x36e   : > { %1620 = vst.msk [vmem:[#allocation5 + $0x28] sm:$0xff] %vm564_vm3, %v3926_v18  ;;  %v3932_v37 = vld [vmem:[#allocation3 + $0x40] sm:$0xff] }
 0x36f   : > { %1815 = vrot.lane.b32.xlu0 %v3897_v26, %s3263_s7  ;;  %1623 = vst.msk [vmem:[#allocation5 + $0x40] sm:$0xff] %vm564_vm3, %v3932_v37  ;;  %v2270_v51 = vld [vmem:[#allocation5 + $0x10] sm:$0xff] }
 0x370   : > { %v3934_v38 = vld [vmem:[#allocation3 + $0x30] sm:$0xff]  ;;  %1811 = vrot.lane.b32.xlu1 %v3899_v28, %s3263_s7 }
 0x371   : > { %2435 = vmatpush1.bf16.msra.mxu1 %v3934_v38  ;;  %v3943_v52 = vld [vmem:[#allocation3 + $0x48] sm:$0xff] }
 0x372   : > { %2436 = vmatprep.subr.bf16.mxu1 %v3922_v35 }
 0x373   : > { %1895 = vrot.lane.b32.xlu0 %v3897_v26, %s3264_s15 }
 0x374   : > { %1891 = vrot.lane.b32.xlu1 %v3899_v28, %s3264_s15  ;;  %v3951_v39 = vld [vmem:[#allocation3 + $0x58] sm:$0xff] }
 0x375   : > { %2437 = vmatpush1.bf16.msra.mxu1 %v3943_v52  ;;  %1626 = vst.msk [vmem:[#allocation5 + $0x58] sm:$0xff] %vm564_vm3, %v3951_v39  ;;  %v2273_v10 = vld [vmem:[#allocation5 + $0x28] sm:$0xff] }
 0x377   : > { %1657 = vrot.lane.b32.xlu0 %v3913_v30, %s3261_s14 }
 0x378   : > { %1653 = vrot.lane.b32.xlu1 %v3886_v19, %s3261_s14 }
 0x37b   : > { %1737 = vrot.lane.b32.xlu0 %v3913_v30, %s3262_s6 }
 0x37c   : > { %1733 = vrot.lane.b32.xlu1 %v3886_v19, %s3262_s6 }
 0x37f   : > { %1817 = vrot.lane.b32.xlu0 %v3913_v30, %s3263_s7 }
 0x380   : > { %1813 = vrot.lane.b32.xlu1 %v3886_v19, %s3263_s7 }
 0x383   : > { %1897 = vrot.lane.b32.xlu0 %v3913_v30, %s3264_s15 }
 0x384   : > { %1893 = vrot.lane.b32.xlu1 %v3886_v19, %s3264_s15 }
 0x387   : > { %1659 = vrot.lane.b32.xlu0 %v3892_v22, %s3261_s14 }
 0x388   : > { %1661 = vrot.lane.b32.xlu1 %v3926_v18, %s3261_s14 }
 0x38b   : > { %1739 = vrot.lane.b32.xlu0 %v3892_v22, %s3262_s6 }
 0x38c   : > { %1741 = vrot.lane.b32.xlu1 %v3926_v18, %s3262_s6 }
 0x38f   : > { %1819 = vrot.lane.b32.xlu0 %v3892_v22, %s3263_s7 }
 0x390   : > { %1821 = vrot.lane.b32.xlu1 %v3926_v18, %s3263_s7 }
 0x393   : > { %1899 = vrot.lane.b32.xlu0 %v3892_v22, %s3264_s15 }
 0x394   : > { %1901 = vrot.lane.b32.xlu1 %v3926_v18, %s3264_s15 }
 0x397   : > { %1667 = vrot.lane.b32.xlu0 %v3932_v37, %s3261_s14 }
 0x398   : > { %1663 = vrot.lane.b32.xlu1 %v3934_v38, %s3261_s14 }
 0x39b   : > { %1747 = vrot.lane.b32.xlu0 %v3932_v37, %s3262_s6 }
 0x39c   : > { %1743 = vrot.lane.b32.xlu1 %v3934_v38, %s3262_s6 }
 0x39f   : > { %1827 = vrot.lane.b32.xlu0 %v3932_v37, %s3263_s7 }
 0x3a0   : > { %1823 = vrot.lane.b32.xlu1 %v3934_v38, %s3263_s7 }
 0x3a3   : > { %1669 = vrot.lane.b32.xlu0 %v3943_v52, %s3261_s14 }
 0x3a4   : > { %1665 = vrot.lane.b32.xlu1 %v3907_v27, %s3261_s14 }
 0x3a7   : > { %1749 = vrot.lane.b32.xlu0 %v3943_v52, %s3262_s6 }
 0x3a8   : > { %1745 = vrot.lane.b32.xlu1 %v3907_v27, %s3262_s6 }
 0x3ab   : > { %1829 = vrot.lane.b32.xlu0 %v3943_v52, %s3263_s7 }
 0x3ac   : > { %1825 = vrot.lane.b32.xlu1 %v3907_v27, %s3263_s7 }
 0x3af   : > { %1671 = vrot.lane.b32.xlu0 %v3922_v35, %s3261_s14 }
 0x3b0   : > { %1905 = vrot.lane.b32.xlu1 %v3907_v27, %s3264_s15 }
 0x3b3   : > { %1907 = vrot.lane.b32.xlu0 %v3932_v37, %s3264_s15 }
 0x3b4   : > { %1673 = vrot.lane.b32.xlu1 %v3951_v39, %s3261_s14  ;;  %s3172_s14 = scalar_lea.vmem %s3171_s26, 192 }
 0x3b7   : > { %1909 = vrot.lane.b32.xlu0 %v3943_v52, %s3264_s15 }
 0x3b8   : > { %1903 = vrot.lane.b32.xlu1 %v3934_v38, %s3264_s15 }
 0x3bb   : > { %1975 = vrot.lane.b32.xlu0 %v3897_v26, %s3265_s10 }
 0x3bc   : > { %1973 = vrot.lane.b32.xlu1 %v3886_v19, %s3265_s10 }
 0x3bf   : > { %1751 = vrot.lane.b32.xlu0 %v3922_v35, %s3262_s6 }
 0x3c0   : > { %1971 = vrot.lane.b32.xlu1 %v3899_v28, %s3265_s10 }
 0x3c3   : > { %1979 = vrot.lane.b32.xlu0 %v3892_v22, %s3265_s10 }
 0x3c4   : > { %1753 = vrot.lane.b32.xlu1 %v3951_v39, %s3262_s6  ;;  %s4433_s6 = smov 91  }
 0x3c7   : > { %1977 = vrot.lane.b32.xlu0 %v3913_v30, %s3265_s10 }
 0x3c8   : > { %1981 = vrot.lane.b32.xlu1 %v3926_v18, %s3265_s10 }
 0x3cb   : > { %1987 = vrot.lane.b32.xlu0 %v3932_v37, %s3265_s10 }
 0x3cc   : > { %1985 = vrot.lane.b32.xlu1 %v3907_v27, %s3265_s10 }
 0x3cf   : > { %1831 = vrot.lane.b32.xlu0 %v3922_v35, %s3263_s7 }
 0x3d0   : > { %1983 = vrot.lane.b32.xlu1 %v3934_v38, %s3265_s10 }
 0x3d3   : > { %1989 = vrot.lane.b32.xlu0 %v3943_v52, %s3265_s10 }
 0x3d4   : > { %1833 = vrot.lane.b32.xlu1 %v3951_v39, %s3263_s7  ;;  %s4434_s7 = smov 90  }
 0x3d7   : > { %2055 = vrot.lane.b32.xlu0 %v3897_v26, %s3266_s29 }
 0x3d8   : > { %2053 = vrot.lane.b32.xlu1 %v3886_v19, %s3266_s29 }
 0x3d9   : > { %v1656_v46 = vpop.permute.xlu0 %1655 }
 0x3da   : > { %1697 = vst.msk [vmem:[#allocation5 + $0x70] sm:$0xff] %vm564_vm3, %v1656_v46  ;;  %v1652_v6 = vpop.permute.xlu1 %1651 }
 0x3db   : > { %2059 = vrot.lane.b32.xlu0 %v3892_v22, %s3266_s29 }
 0x3dc   : > { %2051 = vrot.lane.b32.xlu1 %v3899_v28, %s3266_s29 }
 0x3dd   : > { %v1736_v34 = vpop.permute.xlu0 %1735 }
 0x3de   : > { %1777 = vst.msk [vmem:[#allocation5 + $0xd0] sm:$0xff] %vm564_vm3, %v1736_v34  ;;  %v1732_v47 = vpop.permute.xlu1 %1731 }
 0x3df   : > { %1911 = vrot.lane.b32.xlu0 %v3922_v35, %s3264_s15 }
 0x3e0   : > { %2061 = vrot.lane.b32.xlu1 %v3926_v18, %s3266_s29 }
 0x3e1   : > { %v1816_v48 = vpop.permute.xlu0 %1815 }
 0x3e2   : > { %1857 = vst.msk [vmem:[#allocation5 + $0x130] sm:$0xff] %vm564_vm3, %v1816_v48  ;;  %v1812_v53 = vpop.permute.xlu1 %1811 }
 0x3e3   : > { %2057 = vrot.lane.b32.xlu0 %v3913_v30, %s3266_s29 }
 0x3e4   : > { %1913 = vrot.lane.b32.xlu1 %v3951_v39, %s3264_s15 }
 0x3e5   : > { %v1896_v49 = vpop.permute.xlu0 %1895  ;;  %v2294_v50 = vld [vmem:[#allocation5 + $0xd0] sm:$0xff] }
 0x3e6   : > { %1937 = vst.msk [vmem:[#allocation5 + $0x190] sm:$0xff] %vm564_vm3, %v1896_v49  ;;  %v1892_v42 = vpop.permute.xlu1 %1891  ;;  %2876 = vmatprep.subr.bf16.mxu0 %v2294_v50 }
 0x3e7   : > { %2877 = vmatpush3.bf16.msra.mxu0 %v2270_v51  ;;  %2067 = vrot.lane.b32.xlu0 %v3932_v37, %s3266_s29 }
 0x3e8   : > { %2065 = vrot.lane.b32.xlu1 %v3907_v27, %s3266_s29 }
 0x3e9   : > { %v1658_v57 = vpop.permute.xlu0 %1657 }
 0x3ea   : > { %v1654_v56 = vpop.permute.xlu1 %1653 }
 0x3eb   : > { %v1675_v58 = vsel %vm593_vm4, %v1652_v6, %v1654_v56  ;;  %v1676_v60 = vsel %vm593_vm4, %v1654_v56, %v1656_v46  ;;  %2069 = vrot.lane.b32.xlu0 %v3943_v52, %s3266_s29 }
 0x3ec   : > { %2063 = vrot.lane.b32.xlu1 %v3934_v38, %s3266_s29  ;;  %2438 = vmatprep.subr.bf16.mxu1 %v1676_v60 }
 0x3ed   : > { %v1738_v54 = vpop.permute.xlu0 %1737  ;;  %2439 = vmatpush1.bf16.msra.mxu1 %v1675_v58 }
 0x3ee   : > { %v1734_v61 = vpop.permute.xlu1 %1733 }
 0x3ef   : > { %v4104_v63 = vsel %vm634_vm5, %v1732_v47, %v1734_v61  ;;  %v4107_v55 = vsel %vm634_vm5, %v1734_v61, %v1736_v34  ;;  %1991 = vrot.lane.b32.xlu0 %v3922_v35, %s3265_s10 }
 0x3f0   : > { %2133 = vrot.lane.b32.xlu1 %v3886_v19, %s4433_s6 }
 0x3f1   : > { %v1818_v2 = vpop.permute.xlu0 %1817 }
 0x3f2   : > { %v1814_v3 = vpop.permute.xlu1 %1813 }
 0x3f3   : > { %v4114_v4 = vsel %vm675_vm6, %v1812_v53, %v1814_v3  ;;  %v4117_v7 = vsel %vm675_vm6, %v1814_v3, %v1816_v48  ;;  %2135 = vrot.lane.b32.xlu0 %v3897_v26, %s4433_s6  ;;  %v2276_v53 = vld [vmem:[#allocation5 + $0x40] sm:$0xff] }
 0x3f4   : > { %1993 = vrot.lane.b32.xlu1 %v3951_v39, %s3265_s10 }
 0x3f5   : > { %v1898_v5 = vpop.permute.xlu0 %1897 }
 0x3f6   : > { %v1894_v8 = vpop.permute.xlu1 %1893 }
 0x3f7   : > { %v4124_v11 = vsel %vm716_vm7, %v1892_v42, %v1894_v8  ;;  %v4127_v13 = vsel %vm716_vm7, %v1894_v8, %v1896_v49  ;;  %2139 = vrot.lane.b32.xlu0 %v3892_v22, %s4433_s6 }
 0x3f8   : > { %2131 = vrot.lane.b32.xlu1 %v3899_v28, %s4433_s6 }
 0x3f9   : > { %v1660_v41 = vpop.permute.xlu0 %1659 }
 0x3fa   : > { %v1677_v14 = vsel %vm593_vm4, %v1658_v57, %v1660_v41  ;;  %v1662_v15 = vpop.permute.xlu1 %1661 }
 0x3fb   : > { %v1678_v16 = vsel %vm593_vm4, %v1660_v41, %v1662_v15  ;;  %1700 = vst.msk [vmem:[#allocation5 + $0x88] sm:$0xff] %vm564_vm3, %v1662_v15  ;;  %2137 = vrot.lane.b32.xlu0 %v3913_v30, %s4433_s6 }
 0x3fc   : > { %2141 = vrot.lane.b32.xlu1 %v3926_v18, %s4433_s6  ;;  %2440 = vmatprep.subr.bf16.mxu1 %v1678_v16 }
 0x3fd   : > { %v1740_v40 = vpop.permute.xlu0 %1739  ;;  %2441 = vmatpush1.bf16.msra.mxu1 %v1677_v14 }
 0x3fe   : > { %v4141_v1 = vsel %vm634_vm5, %v1738_v54, %v1740_v40  ;;  %v1742_v17 = vpop.permute.xlu1 %1741  ;;  %v2376_v54 = vld [vmem:[%s4399_s4] sm:$0x3] }
 0x3ff   : > { %v4144_v20 = vsel %vm634_vm5, %v1740_v40, %v1742_v17  ;;  %1780 = vst.msk [vmem:[#allocation5 + $0xe8] sm:$0xff] %vm564_vm3, %v1742_v17  ;;  %2071 = vrot.lane.b32.xlu0 %v3922_v35, %s3266_s29 }
 0x400   : > { %2145 = vrot.lane.b32.xlu1 %v3907_v27, %s4433_s6 }
 0x401   : > { %v1820_v21 = vpop.permute.xlu0 %1819 }
 0x402   : > { %v4152_v23 = vsel %vm675_vm6, %v1818_v2, %v1820_v21  ;;  %v1822_v24 = vpop.permute.xlu1 %1821 }
 0x403   : > { %v4155_v25 = vsel %vm675_vm6, %v1820_v21, %v1822_v24  ;;  %1860 = vst.msk [vmem:[#allocation5 + $0x148] sm:$0xff] %vm564_vm3, %v1822_v24  ;;  %2147 = vrot.lane.b32.xlu0 %v3932_v37, %s4433_s6 }
 0x404   : > { %2073 = vrot.lane.b32.xlu1 %v3951_v39, %s3266_s29  ;;  %s2991_s29 = smul.u32 6, %s3443_s23 }
 0x405   : > { %v1900_v29 = vpop.permute.xlu0 %1899 }
 0x406   : > { %v4163_v32 = vsel %vm716_vm7, %v1898_v5, %v1900_v29  ;;  %v1902_v33 = vpop.permute.xlu1 %1901  ;;  %v2297_v36 = vld [vmem:[#allocation5 + $0xe8] sm:$0xff]  ;;  %s257_s17 = scalar_lea.vmem [#allocation11], %s2991_s29 }
 0x407   : > { %v4166_v31 = vsel %vm716_vm7, %v1900_v29, %v1902_v33  ;;  %1940 = vst.msk [vmem:[#allocation5 + $0x1a8] sm:$0xff] %vm564_vm3, %v1902_v33  ;;  %2878 = vmatprep.subr.bf16.mxu0 %v2297_v36  ;;  %2149 = vrot.lane.b32.xlu0 %v3943_v52, %s4433_s6  ;;  %s2714_s27 = sshll.u32 %s257_s17, 4  ;;  %s4353_s27 = int_to_ptr.vmem [resolvable:$true] %s2714_s27 }
 0x408   : > { %2143 = vrot.lane.b32.xlu1 %v3934_v38, %s4433_s6  ;;  %2879 = vmatpush3.bf16.msra.mxu0 %v2273_v10  ;;  %v2279_v10 = vld [vmem:[#allocation5 + $0x58] sm:$0xff]  ;;  %s3166_s24 = scalar_lea.vmem %s4353_s27, 96  ;;  %p3173_p10 = scmp.lt.s32.totalorder %s4353_s27, %s3171_s26 }
 0x409   : > { %v1668_v45 = vpop.permute.xlu0 %1667  ;;  %p3167_p4 = scmp.ne.s32.totalorder %s4353_s27, %s3166_s24  ;;  %p3174_p13 = scmp.lt.s32.totalorder %s3172_s14, %s3166_s24 }
 0x40a   : > { %1703 = vst.msk [vmem:[#allocation5 + $0xa0] sm:$0xff] %vm564_vm3, %v1668_v45  ;;  %v1664_v46 = vpop.permute.xlu1 %1663 }
 0x40b   : > { %2215 = vrot.lane.b32.xlu0 %v3897_v26, %s4434_s7  ;;  %p3168_p6 = pnand %p3167_p4, %p3395_p12  ;;  %p3175_p3 = por %p3174_p13, %p3173_p10 }
 0x40c   : > { %2213 = vrot.lane.b32.xlu1 %v3886_v19, %s4434_s7 }
 0x40d   : > { %v1748_v59 = vpop.permute.xlu0 %1747  ;;  %p3169_p8 = pneg %p3168_p6 }
 0x40e   : > { %1783 = vst.msk [vmem:[#allocation5 + $0x100] sm:$0xff] %vm564_vm3, %v1748_v59  ;;  %v1744_v6 = vpop.permute.xlu1 %1743 }
 0x40f   : > { %2151 = vrot.lane.b32.xlu0 %v3922_v35, %s4433_s6  ;;  %p3176_p7 = pnand %p3175_p3, %p3169_p8 }
 0x410   : > { %2211 = vrot.lane.b32.xlu1 %v3899_v28, %s4434_s7 }
 0x411   : > { %v1828_v34 = vpop.permute.xlu0 %1827 }
 0x412   : > { %1863 = vst.msk [vmem:[#allocation5 + $0x160] sm:$0xff] %vm564_vm3, %v1828_v34  ;;  %v1824_v47 = vpop.permute.xlu1 %1823 }
 0x413   : > { %2219 = vrot.lane.b32.xlu0 %v3892_v22, %s4434_s7 }
 0x414   : > { %2153 = vrot.lane.b32.xlu1 %v3951_v39, %s4433_s6 }
 0x415   : > { %v1670_v19 = vpop.permute.xlu0 %1669  ;;  %v2300_v26 = vld [vmem:[#allocation5 + $0x100] sm:$0xff] }
 0x416   : > { %v1666_v48 = vpop.permute.xlu1 %1665  ;;  %2880 = vmatprep.subr.bf16.mxu0 %v2300_v26 }
 0x417   : > { %v1679_v49 = vsel %vm593_vm4, %v1664_v46, %v1666_v48  ;;  %v1680_v50 = vsel %vm593_vm4, %v1666_v48, %v1668_v45  ;;  %2217 = vrot.lane.b32.xlu0 %v3913_v30, %s4434_s7  ;;  %2881 = vmatpush3.bf16.msra.mxu0 %v2276_v53  ;;  %v4273_v48 = vrot.slane %v4066_v43, %v4060_v12 }
 0x418   : > { %2221 = vrot.lane.b32.xlu1 %v3926_v18, %s4434_s7  ;;  %2442 = vmatprep.subr.bf16.mxu1 %v1680_v50 }
 0x419   : > { %v1750_v22 = vpop.permute.xlu0 %1749  ;;  %2443 = vmatpush1.bf16.msra.mxu1 %v1679_v49  ;;  %v2312_v26 = vld [vmem:[#allocation5 + $0x160] sm:$0xff]  ;;  %v2421_v49 = vcombine.high %v4076_v9, %v4076_v9 }
 0x41a   : > { %v1746_v28 = vpop.permute.xlu1 %1745 }
 0x41b   : > { %v1759_v42 = vsel %vm634_vm5, %v1744_v6, %v1746_v28  ;;  %v1760_v51 = vsel %vm634_vm5, %v1746_v28, %v1748_v59  ;;  %2227 = vrot.lane.b32.xlu0 %v3932_v37, %s4434_s7  ;;  %v2309_v6 = vld [vmem:[#allocation5 + $0x148] sm:$0xff]  ;;  %v2288_v28 = vld [vmem:[#allocation5 + $0xa0] sm:$0xff] }
 0x41c   : > { %2225 = vrot.lane.b32.xlu1 %v3907_v27, %s4434_s7 }
 0x41d   : > { %v4200_v57 = vpop.permute.xlu0 %1829 }
 0x41e   : > { %v1826_v30 = vpop.permute.xlu1 %1825 }
 0x41f   : > { %v4203_v56 = vsel %vm675_vm6, %v1824_v47, %v1826_v30  ;;  %v4206_v18 = vsel %vm675_vm6, %v1826_v30, %v1828_v34  ;;  %2231 = vrot.lane.b32.xlu0 %v3922_v35, %s4434_s7 }
 0x420   : > { %2223 = vrot.lane.b32.xlu1 %v3934_v38, %s4434_s7 }
 0x421   : > { %v1672_v58 = vpop.permute.xlu0 %1671 }
 0x422   : > { %v1681_v37 = vsel %vm593_vm4, %v1670_v19, %v1672_v58  ;;  %v1906_v60 = vpop.permute.xlu1 %1905  ;;  %v2285_v19 = vld [vmem:[#allocation5 + $0x88] sm:$0xff] }
 0x423   : > { %2229 = vrot.lane.b32.xlu0 %v3943_v52, %s4434_s7 }
 0x424   : > { %2233 = vrot.lane.b32.xlu1 %v3951_v39, %s4434_s7 }
 0x425   : > { %v1908_v27 = vpop.permute.xlu0 %1907 }
 0x426   : > { %v4221_v35 = vsel %vm716_vm7, %v1906_v60, %v1908_v27  ;;  %1943 = vst.msk [vmem:[#allocation5 + $0x1c0] sm:$0xff] %vm564_vm3, %v1908_v27  ;;  %v1674_v38 = vpop.permute.xlu1 %1673 }
 0x427   : > { %v1682_v61 = vsel %vm593_vm4, %v1672_v58, %v1674_v38  ;;  %1706 = vst.msk [vmem:[#allocation5 + $0xb8] sm:$0xff] %vm564_vm3, %v1674_v38  ;;  %vm4435_vm4 = vcmask 744448  }
 0x428   : > { %2379 = vperm.xlu1 %3090, %v2376_v54   ;;  %2444 = vmatprep.subr.bf16.mxu1 %v1682_v61  ;;  %v2321_v61 = vld [vmem:[#allocation5 + $0x1a8] sm:$0xff]  ;;  %vm4440_vm11 = vmmov %vm4435_vm4 }
 0x429   : > { %v4226_v52 = vpop.permute.xlu0 %1909  ;;  %2445 = vmatpush1.bf16.msra.mxu1 %v1681_v37  ;;  %vm4444_vm15 = vmmov %vm4435_vm4 }
 0x42a   : > { %v1904_v39 = vpop.permute.xlu1 %1903  ;;  %2446 = vmatprep.subr.bf16.mxu1 %v4107_v55 }
 0x42b   : > { %v4230_v2 = vsel %vm716_vm7, %v1904_v39, %v1906_v60 }
 0x42d   : > { %v1976_v3 = vpop.permute.xlu0 %1975  ;;  %2447 = vmatpush1.bf16.msra.mxu1 %v4104_v63 }
 0x42e   : > { %2017 = vst.msk [vmem:[#allocation5 + $0x1f0] sm:$0xff] %vm564_vm3, %v1976_v3  ;;  %v1974_v5 = vpop.permute.xlu1 %1973  ;;  %2448 = vmatprep.subr.bf16.mxu1 %v4144_v20 }
 0x42f   : > { %v4236_v8 = vsel %vm757_vm8, %v1974_v5, %v1976_v3 }
 0x431   : > { %v1752_v41 = vpop.permute.xlu0 %1751  ;;  %2449 = vmatpush1.bf16.msra.mxu1 %v4141_v1 }
 0x432   : > { %v1761_v14 = vsel %vm634_vm5, %v1750_v22, %v1752_v41  ;;  %v1972_v55 = vpop.permute.xlu1 %1971  ;;  %2450 = vmatprep.subr.bf16.mxu1 %v1760_v51 }
 0x433   : > { %v4241_v15 = vsel %vm757_vm8, %v1972_v55, %v1974_v5 }
 0x435   : > { %v1980_v16 = vpop.permute.xlu0 %1979  ;;  %2451 = vmatpush1.bf16.msra.mxu1 %v1759_v42 }
 0x436   : > { %v1754_v63 = vpop.permute.xlu1 %1753 }
 0x437   : > { %v1762_v40 = vsel %vm634_vm5, %v1752_v41, %v1754_v63  ;;  %1786 = vst.msk [vmem:[#allocation5 + $0x118] sm:$0xff] %vm564_vm3, %v1754_v63  ;;  %vm4436_vm5 = vmmov %vm4435_vm4 }
 0x438   : > { %2452 = vmatprep.subr.bf16.mxu1 %v1762_v40 }
 0x439   : > { %v1978_v17 = vpop.permute.xlu0 %1977  ;;  %2453 = vmatpush1.bf16.msra.mxu1 %v1761_v14  ;;  %v2324_v14 = vld [vmem:[#allocation5 + $0x1c0] sm:$0xff] }
 0x43a   : > { %v4246_v20 = vsel %vm757_vm8, %v1978_v17, %v1980_v16  ;;  %v1982_v1 = vpop.permute.xlu1 %1981  ;;  %2454 = vmatprep.subr.bf16.mxu1 %v4117_v7  ;;  %v2306_v7 = vld [vmem:[#allocation5 + $0x130] sm:$0xff] }
 0x43b   : > { %v4250_v21 = vsel %vm757_vm8, %v1980_v16, %v1982_v1  ;;  %2020 = vst.msk [vmem:[#allocation5 + $0x208] sm:$0xff] %vm564_vm3, %v1982_v1 }
 0x43d   : > { %v1988_v24 = vpop.permute.xlu0 %1987  ;;  %2455 = vmatpush1.bf16.msra.mxu1 %v4114_v4 }
 0x43e   : > { %2023 = vst.msk [vmem:[#allocation5 + $0x220] sm:$0xff] %vm564_vm3, %v1988_v24  ;;  %v1986_v29 = vpop.permute.xlu1 %1985  ;;  %v2303_v33 = vld [vmem:[#allocation5 + $0x118] sm:$0xff]  ;;  %2456 = vmatprep.subr.bf16.mxu1 %v4155_v25  ;;  %v2282_v25 = vld [vmem:[#allocation5 + $0x70] sm:$0xff] }
 0x43f   : > { %v4257_v36 = vsel %vm757_vm8, %v1986_v29, %v1988_v24  ;;  %2882 = vmatprep.subr.bf16.mxu0 %v2303_v33 }
 0x440   : > { %2883 = vmatpush3.bf16.msra.mxu0 %v2279_v10 }
 0x441   : > { %2884 = vmatprep.subr.bf16.mxu0 %v2306_v7  ;;  %v1832_v45 = vpop.permute.xlu0 %1831  ;;  %2457 = vmatpush1.bf16.msra.mxu1 %v4152_v23 }
 0x442   : > { %v1841_v4 = vsel %vm675_vm6, %v4200_v57, %v1832_v45  ;;  %v1984_v46 = vpop.permute.xlu1 %1983  ;;  %2458 = vmatprep.subr.bf16.mxu1 %v4206_v18  ;;  %v2291_v57 = vld [vmem:[#allocation5 + $0xb8] sm:$0xff] }
 0x443   : > { %v4264_v59 = vsel %vm757_vm8, %v1984_v46, %v1986_v29 }
 0x444   : > { %2885 = vmatpush3.bf16.msra.mxu0 %v2282_v25 }
 0x445   : > { %2886 = vmatprep.subr.bf16.mxu0 %v2309_v6  ;;  %v4266_v34 = vpop.permute.xlu0 %1989  ;;  %2459 = vmatpush1.bf16.msra.mxu1 %v4203_v56 }
 0x446   : > { %v1834_v47 = vpop.permute.xlu1 %1833 }
 0x447   : > { %v1842_v23 = vsel %vm675_vm6, %v1832_v45, %v1834_v47  ;;  %1866 = vst.msk [vmem:[#allocation5 + $0x178] sm:$0xff] %vm564_vm3, %v1834_v47  ;;  %vm4437_vm6 = vmmov %vm4435_vm4 }
 0x448   : > { %2887 = vmatpush3.bf16.msra.mxu0 %v2285_v19  ;;  %2460 = vmatprep.subr.bf16.mxu1 %v1842_v23 }
 0x449   : > { %2888 = vmatprep.subr.bf16.mxu0 %v2312_v26  ;;  %v2056_v53 = vpop.permute.xlu0 %2055  ;;  %2461 = vmatpush1.bf16.msra.mxu1 %v1841_v4 }
 0x44a   : > { %2097 = vst.msk [vmem:[#allocation5 + $0x250] sm:$0xff] %vm564_vm3, %v2056_v53  ;;  %v2054_v50 = vpop.permute.xlu1 %2053  ;;  %2471 = vmatprep.subr.bf16.mxu1 %v4127_v13 }
 0x44b   : > { %v4280_v22 = vsel %vm798_vm9, %v2054_v50, %v2056_v53 }
 0x44c   : > { %2889 = vmatpush3.bf16.msra.mxu0 %v2288_v28  ;;  %2463 = vmatmul.mubr.bf16.vlgmr.msra.gmra.mrb[24].mxu1 %v4273_v48 }
 0x44d   : > { %v2060_v43 = vpop.permute.xlu0 %2059  ;;  %2472 = vmatpush1.bf16.msra.mxu1 %v4124_v11  ;;  %2503 = vmatprep.mubr.bf16.mxu1 %v2421_v49 }
 0x44e   : > { %v2052_v42 = vpop.permute.xlu1 %2051  ;;  %v2315_v51 = vld [vmem:[#allocation5 + $0x178] sm:$0xff]  ;;  %2473 = vmatprep.subr.bf16.mxu1 %v4166_v31  ;;  %v2318_v31 = vld [vmem:[#allocation5 + $0x190] sm:$0xff] }
 0x44f   : > { %v2075_v9 = vsel %vm798_vm9, %v2052_v42, %v2054_v50  ;;  %2890 = vmatprep.subr.bf16.mxu0 %v2315_v51 }
 0x450   : > { %2891 = vmatpush3.bf16.msra.mxu0 %v2291_v57 }
 0x451   : > { %v1912_v13 = vpop.permute.xlu0 %1911  ;;  %v2342_v30 = vld [vmem:[#allocation5 + $0x250] sm:$0xff]  ;;  %2474 = vmatpush1.bf16.msra.mxu1 %v4163_v32 }
 0x452   : > { %v1921_v56 = vsel %vm716_vm7, %v4226_v52, %v1912_v13  ;;  %v2062_v18 = vpop.permute.xlu1 %2061  ;;  %2898 = vmatprep.subr.bf16.mxu0 %v2342_v30  ;;  %2475 = vmatprep.subr.bf16.mxu1 %v4221_v35 }
 0x453   : > { %v2078_v11 = vsel %vm798_vm9, %v2060_v43, %v2062_v18  ;;  %2100 = vst.msk [vmem:[#allocation5 + $0x268] sm:$0xff] %vm564_vm3, %v2062_v18  ;;  %2586 = vmatmul.mubr.bf16.vlgmr.msra.gmra.mrb[16].mxu0 %v4273_v48 }
 0x454   : > { %2899 = vmatpush3.bf16.msra.mxu0 %v2318_v31  ;;  %2625 = vmatprep.mubr.bf16.mxu0 %v2421_v49 }
 0x455   : > { %v2058_v58 = vpop.permute.xlu0 %2057  ;;  %2476 = vmatpush1.bf16.msra.mxu1 %v4230_v2 }
 0x456   : > { %v2077_v32 = vsel %vm798_vm9, %v2058_v58, %v2060_v43  ;;  %v1914_v37 = vpop.permute.xlu1 %1913  ;;  %v2330_v43 = vld [vmem:[#allocation5 + $0x1f0] sm:$0xff] }
 0x457   : > { %v1922_v60 = vsel %vm716_vm7, %v1912_v13, %v1914_v37  ;;  %1946 = vst.msk [vmem:[#allocation5 + $0x1d8] sm:$0xff] %vm564_vm3, %v1914_v37  ;;  %vm4438_vm7 = vmmov %vm4435_vm4  ;;  %v2333_v13 = vld [vmem:[#allocation5 + $0x208] sm:$0xff] }
 0x458   : > { %2477 = vmatprep.subr.bf16.mxu1 %v1922_v60 }
 0x459   : > { %v2068_v27 = vpop.permute.xlu0 %2067  ;;  %2478 = vmatpush1.bf16.msra.mxu1 %v1921_v56  ;;  %v2420_v56 = vcombine.high %v4273_v48, %v4273_v48 }
 0x45a   : > { %2103 = vst.msk [vmem:[#allocation5 + $0x280] sm:$0xff] %vm564_vm3, %v2068_v27  ;;  %v2066_v54 = vpop.permute.xlu1 %2065  ;;  %v2345_v35 = vld [vmem:[#allocation5 + $0x268] sm:$0xff]  ;;  %2479 = vmatprep.subr.bf16.mxu1 %v4236_v8 }
 0x45b   : > { %v2080_v38 = vsel %vm798_vm9, %v2066_v54, %v2068_v27  ;;  %2900 = vmatprep.subr.bf16.mxu0 %v2345_v35  ;;  %v2383_v35 = vcombine.high %v4057_v62, %v4057_v62 }
 0x45c   : > { %2901 = vmatpush3.bf16.msra.mxu0 %v2321_v61  ;;  %v3270_v61 = vmov 0.0  }
 0x45d   : > { %v2070_v52 = vpop.permute.xlu0 %2069  ;;  %2480 = vmatpush1.bf16.msra.mxu1 %v4241_v15 }
 0x45e   : > { %v2064_v39 = vpop.permute.xlu1 %2063  ;;  %2481 = vmatprep.subr.bf16.mxu1 %v4250_v21  ;;  %v2327_v26 = vld [vmem:[#allocation5 + $0x1d8] sm:$0xff] }
 0x45f   : > { %v2079_v2 = vsel %vm798_vm9, %v2064_v39, %v2066_v54 }
 0x461   : > { %v1992_v3 = vpop.permute.xlu0 %1991  ;;  %v2348_v5 = vld [vmem:[#allocation5 + $0x280] sm:$0xff]  ;;  %2482 = vmatpush1.bf16.msra.mxu1 %v4246_v20 }
 0x462   : > { %v2001_v8 = vsel %vm757_vm8, %v4266_v34, %v1992_v3  ;;  %v2134_v41 = vpop.permute.xlu1 %2133  ;;  %2902 = vmatprep.subr.bf16.mxu0 %v2348_v5  ;;  %2483 = vmatprep.subr.bf16.mxu1 %v4257_v36 }
 0x463   : > { %2903 = vmatpush3.bf16.msra.mxu0 %v2324_v14 }
 0x465   : > { %v2136_v55 = vpop.permute.xlu0 %2135  ;;  %2484 = vmatpush1.bf16.msra.mxu1 %v4264_v59 }
 0x466   : > { %v2156_v15 = vsel %vm4435_vm4, %v2134_v41, %v2136_v55  ;;  %2177 = vst.msk [vmem:[#allocation5 + $0x2b0] sm:$0xff] %vm564_vm3, %v2136_v55  ;;  %v1994_v16 = vpop.permute.xlu1 %1993 }
 0x467   : > { %v2002_v63 = vsel %vm757_vm8, %v1992_v3, %v1994_v16  ;;  %2026 = vst.msk [vmem:[#allocation5 + $0x238] sm:$0xff] %vm564_vm3, %v1994_v16  ;;  %vm4439_vm8 = vmmov %vm4435_vm4 }
 0x468   : > { %2485 = vmatprep.subr.bf16.mxu1 %v2002_v63 }
 0x469   : > { %v2140_v40 = vpop.permute.xlu0 %2139  ;;  %2486 = vmatpush1.bf16.msra.mxu1 %v2001_v8 }
 0x46a   : > { %v2132_v17 = vpop.permute.xlu1 %2131  ;;  %2487 = vmatprep.subr.bf16.mxu1 %v4280_v22 }
 0x46b   : > { %v2155_v20 = vsel %vm4436_vm5, %v2132_v17, %v2134_v41  ;;  %vm4450_vm5 = vmmov %vm4445_vm0 }
 0x46d   : > { %v2138_v1 = vpop.permute.xlu0 %2137  ;;  %2488 = vmatpush1.bf16.msra.mxu1 %v2075_v9  ;;  %v2354_v53 = vld [vmem:[#allocation5 + $0x2b0] sm:$0xff] }
 0x46e   : > { %v2157_v21 = vsel %vm4437_vm6, %v2138_v1, %v2140_v40  ;;  %v2142_v24 = vpop.permute.xlu1 %2141  ;;  %2489 = vmatprep.subr.bf16.mxu1 %v2078_v11  ;;  %v2339_v54 = vld [vmem:[#allocation5 + $0x238] sm:$0xff]  ;;  %vm2426_vm6 = vcmask 523264  }
 0x46f   : > { %v2158_v29 = vsel %vm4438_vm7, %v2140_v40, %v2142_v24  ;;  %2180 = vst.msk [vmem:[#allocation5 + $0x2c8] sm:$0xff] %vm564_vm3, %v2142_v24  ;;  %vm2694_vm7 = vcmask 1043458  }
 0x471   : > { %v2072_v33 = vpop.permute.xlu0 %2071  ;;  %2490 = vmatpush1.bf16.msra.mxu1 %v2077_v32  ;;  %v2336_v32 = vld [vmem:[#allocation5 + $0x220] sm:$0xff] }
 0x472   : > { %v2081_v36 = vsel %vm798_vm9, %v2070_v52, %v2072_v33  ;;  %v2146_v10 = vpop.permute.xlu1 %2145  ;;  %2491 = vmatprep.subr.bf16.mxu1 %v2080_v38 }
 0x475   : > { %v2148_v7 = vpop.permute.xlu0 %2147  ;;  %2492 = vmatpush1.bf16.msra.mxu1 %v2079_v2  ;;  %v2397_v2 = vrot.slane %v2383_v35, %v4060_v12 }
 0x476   : > { %v2160_v45 = vsel %vm4439_vm8, %v2146_v10, %v2148_v7  ;;  %2183 = vst.msk [vmem:[#allocation5 + $0x2e0] sm:$0xff] %vm564_vm3, %v2148_v7  ;;  %v2074_v4 = vpop.permute.xlu1 %2073  ;;  %v2357_v42 = vld [vmem:[#allocation5 + $0x2c8] sm:$0xff]  ;;  %v3272_v7 = vmov 1983009808  }
 0x477   : > { %v2082_v46 = vsel %vm798_vm9, %v2072_v33, %v2074_v4  ;;  %2106 = vst.msk [vmem:[#allocation5 + $0x298] sm:$0xff] %vm564_vm3, %v2074_v4  ;;  %vm4442_vm9 = vmmov %vm4435_vm4  ;;  %v2412_v14 = vrot.slane %v2397_v2, %v4060_v12 }
 0x478   : > { %2493 = vmatprep.subr.bf16.mxu1 %v2082_v46  ;;  %vm4449_vm4 = vmmov %vm4445_vm0 }
 0x479   : > { %v2150_v59 = vpop.permute.xlu0 %2149  ;;  %2494 = vmatpush1.bf16.msra.mxu1 %v2081_v36 }
 0x47a   : > { %v2144_v25 = vpop.permute.xlu1 %2143  ;;  %2495 = vmatprep.subr.bf16.mxu1 %v2156_v15 }
 0x47b   : > { %v2159_v6 = vsel %vm4440_vm11, %v2144_v25, %v2146_v10  ;;  %vm2696_vm11 = vcmask 259076  }
 0x47d   : > { %v2216_v34 = vpop.permute.xlu0 %2215  ;;  %2496 = vmatpush1.bf16.msra.mxu1 %v2155_v20  ;;  %v2360_v30 = vld [vmem:[#allocation5 + $0x2e0] sm:$0xff] }
 0x47e   : > { %2257 = vst.msk [vmem:[#allocation5 + $0x310] sm:$0xff] %vm564_vm3, %v2216_v34  ;;  %v2214_v47 = vpop.permute.xlu1 %2213  ;;  %v2351_v23 = vld [vmem:[#allocation5 + $0x298] sm:$0xff]  ;;  %2497 = vmatprep.subr.bf16.mxu1 %v2158_v29 }
 0x47f   : > { %v2236_v19 = vsel %vm4441_vm10, %v2214_v47, %v2216_v34  ;;  %2904 = vmatprep.subr.bf16.mxu0 %v2351_v23 }
 0x480   : > { %2905 = vmatpush3.bf16.msra.mxu0 %v2327_v26 }
 0x481   : > { %2906 = vmatprep.subr.bf16.mxu0 %v2354_v53  ;;  %v2152_v49 = vpop.permute.xlu0 %2151  ;;  %2498 = vmatpush1.bf16.msra.mxu1 %v2157_v21 }
 0x482   : > { %v2161_v50 = vsel %vm4442_vm9, %v2150_v59, %v2152_v49  ;;  %v2212_v22 = vpop.permute.xlu1 %2211  ;;  %2499 = vmatprep.subr.bf16.mxu1 %v2160_v45  ;;  %v2678_v45 = vunpack.c.l.s4 %v3272_v7 }
 0x483   : > { %v2235_v28 = vsel %vm4443_vm14, %v2212_v22, %v2214_v47 }
 0x484   : > { %2907 = vmatpush3.bf16.msra.mxu0 %v2330_v43  ;;  %v2679_v25 = vunpack.c.0.s8 %v2678_v45 }
 0x485   : > { %2908 = vmatprep.subr.bf16.mxu0 %v2357_v42  ;;  %v2220_v51 = vpop.permute.xlu0 %2219  ;;  %2500 = vmatpush1.bf16.msra.mxu1 %v2159_v6  ;;  %v2366_v39 = vld [vmem:[#allocation5 + $0x310] sm:$0xff] }
 0x486   : > { %v2154_v9 = vpop.permute.xlu1 %2153 }
 0x487   : > { %v2162_v57 = vsel %vm4444_vm15, %v2152_v49, %v2154_v9  ;;  %2186 = vst.msk [vmem:[#allocation5 + $0x2f8] sm:$0xff] %vm564_vm3, %v2154_v9 }
 0x488   : > { %2909 = vmatpush3.bf16.msra.mxu0 %v2333_v13  ;;  %2501 = vmatprep.subr.bf16.mxu1 %v2162_v57 }
 0x489   : > { %2910 = vmatprep.subr.bf16.mxu0 %v2360_v30  ;;  %v2218_v18 = vpop.permute.xlu0 %2217  ;;  %2502 = vmatpush1.bf16.msra.mxu1 %v2161_v50 }
 0x48a   : > { %v2237_v11 = vsel %vm4445_vm0, %v2218_v18, %v2220_v51  ;;  %v2222_v31 = vpop.permute.xlu1 %2221  ;;  %2512 = vmatprep.subr.bf16.mxu1 %v2236_v19  ;;  %v2682_v19 = vsub.s32 %v2679_v25, %v4048_v44 }
 0x48b   : > { %v2238_v58 = vsel %vm4446_vm1, %v2220_v51, %v2222_v31  ;;  %2260 = vst.msk [vmem:[#allocation5 + $0x328] sm:$0xff] %vm564_vm3, %v2222_v31 }
 0x48c   : > { %2911 = vmatpush3.bf16.msra.mxu0 %v2336_v32  ;;  %2504 = vmatmul.mubr.bf16.vlgmr.msra.gmra.mrb[24].mxu1 %v2420_v56 }
 0x48d   : > { %v2228_v37 = vpop.permute.xlu0 %2227  ;;  %2513 = vmatpush1.bf16.msra.mxu1 %v2235_v28  ;;  %2544 = vmatprep.mubr.bf16.mxu1 %v3244_v0 }
 0x48e   : > { %2263 = vst.msk [vmem:[#allocation5 + $0x340] sm:$0xff] %vm564_vm3, %v2228_v37  ;;  %v2226_v48 = vpop.permute.xlu1 %2225  ;;  %v2363_v60 = vld [vmem:[#allocation5 + $0x2f8] sm:$0xff]  ;;  %2514 = vmatprep.subr.bf16.mxu1 %v2238_v58 }
 0x48f   : > { %v2240_v27 = vsel %vm4447_vm13, %v2226_v48, %v2228_v37  ;;  %2912 = vmatprep.subr.bf16.mxu0 %v2363_v60 }
 0x490   : > { %2913 = vmatpush3.bf16.msra.mxu0 %v2339_v54 }
 0x491   : > { %v2232_v38 = vpop.permute.xlu0 %2231  ;;  %2937 = vmatprep.subr.bf16.mxu0 %v3270_v61  ;;  %2515 = vmatpush1.bf16.msra.mxu1 %v2237_v11 }
 0x492   : > { %v2224_v52 = vpop.permute.xlu1 %2223  ;;  %2516 = vmatprep.subr.bf16.mxu1 %v2240_v27  ;;  %v2369_v41 = vld [vmem:[#allocation5 + $0x328] sm:$0xff] }
 0x493   : > { %v2239_v0 = vsel %vm4448_vm2, %v2224_v52, %v2226_v48  ;;  %2626 = vmatmul.mubr.bf16.vlgmr.msra.gmra.mrb[20].mxu0 %v2420_v56 }
 0x494   : > { %2938 = vmatpush3.bf16.msra.mxu0 %v2366_v39  ;;  %2945 = vmatprep.mubr.msk.bf16.mxu0 %vm3271_vm12, %v3270_v61 }
 0x495   : > { %v2230_v3 = vpop.permute.xlu0 %2229  ;;  %2939 = vmatprep.subr.bf16.mxu0 %v3270_v61  ;;  %2517 = vmatpush1.bf16.msra.mxu1 %v2239_v0  ;;  %v2372_v55 = vld [vmem:[#allocation5 + $0x340] sm:$0xff] }
 0x496   : > { %v2241_v62 = vsel %vm4449_vm4, %v2230_v3, %v2232_v38  ;;  %v2234_v5 = vpop.permute.xlu1 %2233 }
 0x497   : > { %v2242_v8 = vsel %vm4450_vm5, %v2232_v38, %v2234_v5  ;;  %2266 = vst.msk [vmem:[#allocation5 + $0x358] sm:$0xff] %vm564_vm3, %v2234_v5  ;;  %vm2693_vm3 = vcmask 1041408  }
 0x498   : > { %2940 = vmatpush3.bf16.msra.mxu0 %v2369_v41  ;;  %2518 = vmatprep.subr.bf16.mxu1 %v2242_v8  ;;  %vm2695_vm8 = vmor %vm2694_vm7, %vm2693_vm3 }
 0x499   : > { %2941 = vmatprep.subr.bf16.mxu0 %v3270_v61  ;;  %2519 = vmatpush1.bf16.msra.mxu1 %v2241_v62  ;;  %vm2697_vm10 = vmor %vm2696_vm11, %vm2695_vm8 }
 0x49c   : > { %2942 = vmatpush3.bf16.msra.mxu0 %v2372_v55  ;;  %2824 = vmatmul.mubr.msk.bf16.vlgmr.msra.gmra.mrb[24].mxu1 %vm2426_vm6, %v2412_v14 }
 0x49d   : > { %2943 = vmatprep.subr.bf16.mxu0 %v3270_v61 }
 0x49e   : > { %v2375_v15 = vld [vmem:[#allocation5 + $0x358] sm:$0xff] }
 0x4a0   : > { %2944 = vmatpush3.bf16.msra.mxu0 %v2375_v15 }
 0x4a3   : > { %2946 = vmatmul.mubr.msk.bf16.vlgmr.msra.gmra.mrb[24].mxu0 %vm2426_vm6, %v2412_v14 }
 0x4a7   : > { %v2380_v21 = vpop.permute.xlu1 %2379 }
 0x526   : > { %v2892_v16 = vpop.f32.mrb[16].mxu0 }
 0x527   : > { %v2893_v63 = vpop.f32.mrb[17].mxu0 }
 0x528   : > { %v2894_v40 = vadd.f32 %v2893_v63, %v2892_v16  ;;  %v2895_v17 = vpop.f32.mrb[18].mxu0 }
 0x529   : > { %v2896_v20 = vpop.f32.mrb[19].mxu0 }
 0x52a   : > { %v2588_v12 = vadd.f32 %v2894_v40, %v2380_v21 }
 0x566   : > { %v2914_v1 = vpop.f32.mrb[20].mxu0 }
 0x567   : > { %v2915_v24 = vpop.f32.mrb[21].mxu0 }
 0x568   : > { %v2916_v29 = vadd.f32 %v2915_v24, %v2914_v1  ;;  %v2917_v33 = vpop.f32.mrb[22].mxu0 }
 0x569   : > { %v2918_v36 = vpop.f32.mrb[23].mxu0 }
 0x56a   : > { %v2628_v10 = vadd.f32 %v2916_v29, %v2588_v12 }
 0x56f   : > { %v2546_v4 = vpop.f32.mrb[24].mxu1 }
 0x570   : > { %v2965_v46 = vadd.f32 %v2546_v4, %v2380_v21  ;;  %v2548_v59 = vpop.f32.mrb[25].mxu1 }
 0x571   : > { %v2966_v6 = vadd.f32 %v2548_v59, %v2380_v21  ;;  %v2550_v34 = vpop.f32.mrb[26].mxu1 }
 0x572   : > { %v2551_v47 = vpop.f32.mrb[27].mxu1 }
 0x573   : > { %v2676_v23 = vcombine.low %v2965_v46, %v2966_v6 }
 0x575   : > { %v2683_v28 = vrot.slane %v2676_v23, %v2682_v19 }
 0x576   : > { %v2667_v26 = vpop.f32.mrb[24].mxu0 }
 0x577   : > { %v2668_v53 = vadd.f32 %v2667_v26, %v2628_v10  ;;  %v2947_v49 = vpop.f32.mrb[25].mxu0 }
 0x578   : > { %v2670_v50 = vpop.f32.mrb[26].mxu0 }
 0x579   : > { %v2690_v22 = vrot.slane %v2668_v53, %v2682_v19  ;;  %v2948_v43 = vpop.f32.mrb[27].mxu0 }
 0x57b   : > { %v2691_v42 = vcombine.low %v2683_v28, %v2690_v22 }
 0x57d   : > { %2698 = vst.msk [vmem:[%s257_s17] sm:$0x3f] %vm2697_vm10, %v2691_v42 }
 0x57e   : > { %3179 = shalt.err (!%p3176_p7)
}
 0x57f   : > { %s3180_s23 = scalar_lea.hbm %s4351_s28, 96  ;;  %s3184_s15 = scalar_lea.hbm %s4400_s5, 192 }
 0x580   : > { %p3181_p9 = scmp.ne.s32.totalorder %s4351_s28, %s3180_s23  ;;  %p3185_p5 = scmp.lt.u32.totalorder %s4351_s28, %s4400_s5 }
 0x581   : > { %p3186_p11 = scmp.lt.u32.totalorder %s3184_s15, %s3180_s23  ;;  %p3188_p4 = scmp.lt.u32.totalorder %s3180_s23, %s4351_s28 }
 0x582   : > { %p3182_p2 = pnand %p3181_p9, %p3395_p12 }
 0x583   : > { %p3187_p1 = por %p3186_p11, %p3185_p5 }
 0x584   : > { %p3183_p0 = pneg %p3182_p2 }
 0x585   : > { %p3189_p6 = por %p3188_p4, %p3187_p1 }
 0x587   : > { %p3190_p8 = pnand %p3189_p6, %p3183_p0 }
 0x589   : > { %3193 = shalt.err (!%p3190_p8)
}
 0x58a   : > { %3005 = dma.vmem_to_hbm [thread:$0]  (%p3395_p12), %s4353_s27, 96, %s4351_s28, %s2700_s22  }
 0x58b PF: > { %s2726_s16 = sand.u32 1, %s3224_s18   ;;  %p4451_p10 = scmp.ne.s32.totalorder %s4411_s25, 0 }
 0x58c   : > { %p4452_p13 = scmp.ge.s32.totalorder %s3236_s21, 2  ;;  %s2727_s17 = scalar_lea.sflag [#allocation8], %s2726_s16 }
 0x58e   : > { %p3016_p3 = pnand %p4452_p13, %p4451_p10 }
 0x590   : > { %3219 = dma.done.wait (!%p3016_p3), %s2727_s17, 96  }
 0x591   : > { %3221 = vsyncadd (!%p3016_p3), %s2727_s17, 4294967200  ;;  %p19_p7 = scmp.ge.s32.totalorder %s3360_s30, 4   ;;  %s4453_s18 = smov %s3228_s19 }
 0x592   : > { %s4454_s19 = smov %s3232_s20  ;;  %s4455_s20 = smov %s3391_s8 }
 0x593   : > { %s4456_s21 = smov %s3360_s30  ;;  %21 = sbr.rel (!%p19_p7) target bundleno = 6 (0x6), region = 89 }
 0x59a   :  { %2732 = vsyncpa [#allocation7], 1 }
 0x59b   :  { %2734 = vsyncpa [#allocation7 + $0x1], 1 }
 0x59c   :  { %2735 = vsyncpa [#allocation10], 1 }
 0x59d   :  { %2736 = vsyncpa [#allocation8], 1 }
 0x59e   :  { %2738 = vsyncpa [#allocation8 + $0x1], 1 }

</bundles_post_ra>
